<compile_context>
chip_gen: v7x
topology: tpu7x:2x2x1
jax: 0.10.0
libtpu: 0.0.40
codegen_flags: <defaults>
</compile_context>

<pallas_src>
import jax
import jax.numpy as jnp
from jax import lax
from jax.experimental import pallas as pl
from jax.experimental.pallas import tpu as pltpu

# --------------------------- model hyper-parameters -------------------------
B = 2        # batch
T = 8        # max sequence length
VOCAB = 32   # vocab size
EMB = 16     # emb_dim
CNN = 32     # cnn_dim
KW = 3       # cnn_window_size (odd -> same padding)
PAD = (KW - 1) // 2
H = 32       # rnn_dim
NOUT = 1     # num_outputs = len(initial_mean_value)
IMV = 0.6    # initial_mean_value[0]
TB = T * B                 # valid (time-major, flattened) rows
TPB = (T + KW - 1) * B     # rows including conv 'same' padding


# --------------------------------- kernel -----------------------------------
def fused_kernel(lens_ref, ids_ref, emb_ref, wconv_ref, bconv_ref,
                 wih_ref, whh_ref, bgate_ref, wlin_ref, blin_ref, out_ref):
    """Fused Embedding + Conv1D(same) + LSTM + MeanOverTime + Linear + Sigmoid.

    lens_ref  : (B,)            int32, SMEM
    ids_ref   : (TPB, 1)        int32  time-major padded token ids (-1 = conv pad)
    emb_ref   : (VOCAB, EMB)    f32
    wconv_ref : (KW, EMB, CNN)  f32
    bconv_ref : (1, CNN)        f32
    wih_ref   : (4, CNN, H)     f32   per-gate input weights   (i, f, g, o)
    whh_ref   : (4, H, H)       f32   per-gate recurrent weights
    bgate_ref : (4, 1, H)       f32   per-gate bias (b_ih + b_hh)
    wlin_ref  : (H, NOUT)       f32
    blin_ref  : (1, NOUT)       f32
    out_ref   : (B, NOUT)       f32
    """
    f32 = jnp.float32

    # ---- embedding lookup as a one-hot matmul (id == -1 -> zero row, which
    #      reproduces Conv1d's zero feature padding at the sequence ends) ----
    col = lax.broadcasted_iota(jnp.int32, (TPB, VOCAB), 1)
    onehot = (col == ids_ref[...]).astype(f32)                    # (TPB, VOCAB)
    xpad = jnp.dot(onehot, emb_ref[...],
                   preferred_element_type=f32)                    # (TPB, EMB)

    # ---- 1-D conv with 'same' padding: KW statically shifted matmuls -------
    acc = jnp.zeros((TB, CNN), f32)
    for k in range(KW):                                           # static unroll
        acc = acc + jnp.dot(xpad[k * B:k * B + TB, :], wconv_ref[k],
                            preferred_element_type=f32)
    conv = acc + bconv_ref[...]                                   # (TB, CNN)
    # NOTE: Conv1DWithMasking's output mask is intentionally dropped: it only
    # changes LSTM states at t >= lens[b], and those steps are excluded from
    # the mean-over-time sum below, so the final output is unchanged.

    # ---- hoisted LSTM input projection: one matmul per gate over all steps --
    gates_x = [jnp.dot(conv, wih_ref[g], preferred_element_type=f32)
               + bgate_ref[g] for g in range(4)]                  # 4 x (TB, H)
    whh = [whh_ref[g] for g in range(4)]                          # 4 x (H, H)

    # per-batch sequence lengths broadcast to (B, H) from SMEM scalars
    brow = lax.broadcasted_iota(jnp.int32, (B, H), 0)
    lens_bh = jnp.zeros((B, H), jnp.int32)
    for b in range(B):
        lens_bh = jnp.where(brow == b, lens_ref[b], lens_bh)

    # ---- recurrence (fully unrolled, T static); MOT accumulated in VMEM ----
    h = jnp.zeros((B, H), f32)
    c = jnp.zeros((B, H), f32)
    mot = jnp.zeros((B, H), f32)
    for t in range(T):
        r0 = t * B
        pre = [gates_x[g][r0:r0 + B, :]
               + jnp.dot(h, whh[g], preferred_element_type=f32)
               for g in range(4)]                                 # i, f, g, o
        i_g = jax.nn.sigmoid(pre[0])
        f_g = jax.nn.sigmoid(pre[1])
        g_g = jnp.tanh(pre[2])
        o_g = jax.nn.sigmoid(pre[3])
        c = f_g * c + i_g * g_g
        h = o_g * jnp.tanh(c)
        mot = mot + jnp.where(lens_bh > t, h, 0.0)                # masked MOT sum
    # TODO(synk): hidden/cell state keeps updating past lens (pack_padded
    # semantics differ), but masked mean-over-time makes the output identical.

    # ---- MeanOverTime + Linear + Sigmoid ------------------------------------
    inv_len = 1.0 / jnp.maximum(lens_bh, 1).astype(f32)           # len-0 guard
    pooled = mot * inv_len                                        # (B, H)
    logits = jnp.dot(pooled, wlin_ref[...],
                     preferred_element_type=f32) + blin_ref[...]
    out_ref[...] = jax.nn.sigmoid(logits)


# --------------------------------- wrapper ----------------------------------
def fused_forward(lens, ids_flat, packed):
    vmem = pl.BlockSpec(memory_space=pltpu.MemorySpace.VMEM)
    smem = pl.BlockSpec(memory_space=pltpu.MemorySpace.SMEM)
    return pl.pallas_call(
        fused_kernel,
        out_shape=jax.ShapeDtypeStruct((B, NOUT), jnp.float32),
        in_specs=[smem] + [vmem] * 9,
        out_specs=vmem,
    )(lens, ids_flat, packed["emb"], packed["conv_w"], packed["conv_b"],
      packed["w_ih"], packed["w_hh"], packed["bias"],
      packed["lin_w"], packed["lin_b"])


# --------------------------------- parameters -------------------------------
def init_params(key):
    ks = jax.random.split(key, 8)
    p = {}
    p["emb"] = jax.random.normal(ks[0], (VOCAB, EMB), jnp.float32) * 0.1
    # PyTorch Conv1d weight layout (Cout, Cin, K)
    p["conv_w"] = jax.random.normal(ks[1], (CNN, EMB, KW), jnp.float32) * 0.1
    p["conv_b"] = jax.random.normal(ks[2], (CNN,), jnp.float32) * 0.1
    # PyTorch LSTM: weight_ih_l0 (4H, Cin), weight_hh_l0 (4H, H), gate order i,f,g,o
    p["w_ih"] = jax.random.normal(ks[3], (4 * H, CNN), jnp.float32) * 0.1
    p["w_hh"] = jax.random.normal(ks[4], (4 * H, H), jnp.float32) * 0.1
    p["b_ih"] = jax.random.normal(ks[5], (4 * H,), jnp.float32) * 0.1
    p["b_hh"] = jax.random.normal(ks[6], (4 * H,), jnp.float32) * 0.1
    # PyTorch Linear layout (out, in); bias = log(imv) - log(1 - imv)
    p["lin_w"] = jax.random.normal(ks[7], (NOUT, H), jnp.float32) * 0.1
    p["lin_b"] = jnp.full((NOUT,), jnp.log(IMV) - jnp.log(1.0 - IMV), jnp.float32)
    return p


def pack_params(p):
    """Re-layout PyTorch-style weights into kernel-friendly stacks (done once)."""
    return {
        "emb": p["emb"],                                                 # (VOCAB, EMB)
        "conv_w": jnp.transpose(p["conv_w"], (2, 1, 0)),                 # (KW, EMB, CNN)
        "conv_b": p["conv_b"][None, :],                                  # (1, CNN)
        "w_ih": jnp.transpose(p["w_ih"].reshape(4, H, CNN), (0, 2, 1)),  # (4, CNN, H)
        "w_hh": jnp.transpose(p["w_hh"].reshape(4, H, H), (0, 2, 1)),    # (4, H, H)
        "bias": (p["b_ih"] + p["b_hh"]).reshape(4, 1, H),                # (4, 1, H)
        "lin_w": p["lin_w"].T,                                           # (H, NOUT)
        "lin_b": p["lin_b"][None, :],                                    # (1, NOUT)
    }


# --------------------------------- forward ----------------------------------
def model_forward(packed, x_ids, lens):
    """x_ids: (B, T) int32 padded token ids; lens: (B,) int32 sequence lengths."""
    # Only glue left outside the kernel: reshape the int ids to the time-major
    # padded row layout the kernel expects (-1 marks the conv's zero padding).
    ids_tm = jnp.transpose(x_ids).astype(jnp.int32)                       # (T, B)
    ids_pad = jnp.pad(ids_tm, ((PAD, PAD), (0, 0)), constant_values=-1)   # (T+KW-1, B)
    ids_flat = ids_pad.reshape(TPB, 1)
    return fused_forward(lens.astype(jnp.int32), ids_flat, packed)        # (B, NOUT)


# ------------------------------ pure-JAX reference --------------------------
def reference_forward(params, x_ids, lens):
    b_sz, t_len = x_ids.shape
    mask = (jnp.arange(t_len)[None, :] < lens[:, None]).astype(jnp.float32)
    emb = jnp.take(params["emb"], x_ids, axis=0)
    xpad = jnp.pad(emb, ((0, 0), (PAD, PAD), (0, 0)))
    w_kcio = jnp.transpose(params["conv_w"], (2, 1, 0))
    conv = sum(jnp.einsum("bti,io->bto", xpad[:, k:k + t_len, :], w_kcio[k])
               for k in range(KW)) + params["conv_b"]
    conv = conv * mask[:, :, None]

    wih_t, whh_t = params["w_ih"].T, params["w_hh"].T
    bias = params["b_ih"] + params["b_hh"]
    x_tbc = jnp.transpose(conv, (1, 0, 2))
    mask_tb1 = jnp.transpose(mask, (1, 0))[:, :, None]

    def step(carry, inp):
        h, c = carry
        x_t, m_t = inp
        gates = x_t @ wih_t + h @ whh_t + bias
        i_g = jax.nn.sigmoid(gates[:, 0 * H:1 * H])
        f_g = jax.nn.sigmoid(gates[:, 1 * H:2 * H])
        g_g = jnp.tanh(gates[:, 2 * H:3 * H])
        o_g = jax.nn.sigmoid(gates[:, 3 * H:4 * H])
        c_n = f_g * c + i_g * g_g
        h_n = o_g * jnp.tanh(c_n)
        return (h_n, c_n), h_n * m_t

    init = (jnp.zeros((b_sz, H), jnp.float32), jnp.zeros((b_sz, H), jnp.float32))
    _, h_seq = lax.scan(step, init, (x_tbc, mask_tb1))
    pooled = h_seq.sum(0) / lens.astype(jnp.float32)[:, None]
    return jax.nn.sigmoid(pooled @ params["lin_w"].T + params["lin_b"])


# ----------------------------------- main ------------------------------------
if __name__ == "__main__":
    key = jax.random.PRNGKey(0)
    k_param, k_ids = jax.random.split(key)
    params = init_params(k_param)
    packed = pack_params(params)

    lens = jnp.array([T, 5], dtype=jnp.int32)                        # (B,)
    x_ids = jax.random.randint(k_ids, (B, T), 1, VOCAB, dtype=jnp.int32)
    valid = jnp.arange(T)[None, :] < lens[:, None]
    x_ids = jnp.where(valid, x_ids, 0)                               # pad with id 0

    fwd = jax.jit(model_forward)
    out = jax.block_until_ready(fwd(packed, x_ids, lens))

    ref = reference_forward(params, x_ids, lens)
    assert out.shape == (B, NOUT)
    assert bool(jnp.all(jnp.isfinite(out)))
    assert jnp.allclose(out, ref, atol=1e-3, rtol=1e-3), (out, ref)

    print("KERNEL_OK")
</pallas_src>

<mosaic_0001>
module attributes {stable_mosaic.version = 11 : i64} {
  func.func @fused_kernel(%arg0: memref<2xi32, #tpu.memory_space<smem>>, %arg1: memref<20x1xi32, #tpu.memory_space<vmem>>, %arg2: memref<32x16xf32, #tpu.memory_space<vmem>>, %arg3: memref<3x16x32xf32, #tpu.memory_space<vmem>>, %arg4: memref<1x32xf32, #tpu.memory_space<vmem>>, %arg5: memref<4x32x32xf32, #tpu.memory_space<vmem>>, %arg6: memref<4x32x32xf32, #tpu.memory_space<vmem>>, %arg7: memref<4x1x32xf32, #tpu.memory_space<vmem>>, %arg8: memref<32x1xf32, #tpu.memory_space<vmem>>, %arg9: memref<1x1xf32, #tpu.memory_space<vmem>>, %arg10: memref<2x1xf32, #tpu.memory_space<vmem>>) attributes {dimension_semantics = [], scalar_prefetch = 0 : i64, scratch_operands = 0 : i64, tpu.core_type = #tpu.core_type<tc>} {
    %0 = tpu.iota {dimensions = array<i32: 1>} : vector<20x32xi32>
    %c0 = arith.constant 0 : index
    %c0_0 = arith.constant 0 : index
    %1 = vector.load %arg1[%c0, %c0_0] : memref<20x1xi32, #tpu.memory_space<vmem>>, vector<20x1xi32>
    %2 = vector.broadcast %1 : vector<20x1xi32> to vector<20x32xi32>
    %3 = arith.cmpi eq, %0, %2 : vector<20x32xi32>
    %4 = arith.extui %3 : vector<20x32xi1> to vector<20x32xi32>
    %5 = arith.sitofp %4 : vector<20x32xi32> to vector<20x32xf32>
    %c0_1 = arith.constant 0 : index
    %c0_2 = arith.constant 0 : index
    %6 = vector.load %arg2[%c0_1, %c0_2] : memref<32x16xf32, #tpu.memory_space<vmem>>, vector<32x16xf32>
    %cst = arith.constant dense<0.000000e+00> : vector<20x16xf32>
    %7 = tpu.matmul %5, %6, %cst {dimension_numbers = #tpu.dot_dimension_numbers<[1], [0], [0], [1], [0, 0, 1, 1], [], []>} : vector<20x32xf32>, vector<32x16xf32>, vector<20x16xf32> -> vector<20x16xf32>
    %cst_3 = arith.constant 0.000000e+00 : f32
    %8 = vector.broadcast %cst_3 : f32 to vector<16x32xf32>
    %9 = vector.extract_strided_slice %7 {offsets = [0, 0], sizes = [16, 16], strides = [1, 1]} : vector<20x16xf32> to vector<16x16xf32>
    %c0_4 = arith.constant 0 : index
    %c0_5 = arith.constant 0 : index
    %c0_6 = arith.constant 0 : index
    %10 = vector.load %arg3[%c0_4, %c0_5, %c0_6] : memref<3x16x32xf32, #tpu.memory_space<vmem>>, vector<1x16x32xf32>
    %11 = vector.shape_cast %10 : vector<1x16x32xf32> to vector<16x32xf32>
    %cst_7 = arith.constant dense<0.000000e+00> : vector<16x32xf32>
    %12 = tpu.matmul %9, %11, %cst_7 {dimension_numbers = #tpu.dot_dimension_numbers<[1], [0], [0], [1], [0, 0, 1, 1], [], []>} : vector<16x16xf32>, vector<16x32xf32>, vector<16x32xf32> -> vector<16x32xf32>
    %13 = arith.addf %8, %12 : vector<16x32xf32>
    %14 = vector.extract_strided_slice %7 {offsets = [2, 0], sizes = [16, 16], strides = [1, 1]} : vector<20x16xf32> to vector<16x16xf32>
    %c1 = arith.constant 1 : index
    %c0_8 = arith.constant 0 : index
    %c0_9 = arith.constant 0 : index
    %15 = vector.load %arg3[%c1, %c0_8, %c0_9] : memref<3x16x32xf32, #tpu.memory_space<vmem>>, vector<1x16x32xf32>
    %16 = vector.shape_cast %15 : vector<1x16x32xf32> to vector<16x32xf32>
    %cst_10 = arith.constant dense<0.000000e+00> : vector<16x32xf32>
    %17 = tpu.matmul %14, %16, %cst_10 {dimension_numbers = #tpu.dot_dimension_numbers<[1], [0], [0], [1], [0, 0, 1, 1], [], []>} : vector<16x16xf32>, vector<16x32xf32>, vector<16x32xf32> -> vector<16x32xf32>
    %18 = arith.addf %13, %17 : vector<16x32xf32>
    %19 = vector.extract_strided_slice %7 {offsets = [4, 0], sizes = [16, 16], strides = [1, 1]} : vector<20x16xf32> to vector<16x16xf32>
    %c2 = arith.constant 2 : index
    %c0_11 = arith.constant 0 : index
    %c0_12 = arith.constant 0 : index
    %20 = vector.load %arg3[%c2, %c0_11, %c0_12] : memref<3x16x32xf32, #tpu.memory_space<vmem>>, vector<1x16x32xf32>
    %21 = vector.shape_cast %20 : vector<1x16x32xf32> to vector<16x32xf32>
    %cst_13 = arith.constant dense<0.000000e+00> : vector<16x32xf32>
    %22 = tpu.matmul %19, %21, %cst_13 {dimension_numbers = #tpu.dot_dimension_numbers<[1], [0], [0], [1], [0, 0, 1, 1], [], []>} : vector<16x16xf32>, vector<16x32xf32>, vector<16x32xf32> -> vector<16x32xf32>
    %23 = arith.addf %18, %22 : vector<16x32xf32>
    %c0_14 = arith.constant 0 : index
    %c0_15 = arith.constant 0 : index
    %24 = vector.load %arg4[%c0_14, %c0_15] : memref<1x32xf32, #tpu.memory_space<vmem>>, vector<1x32xf32>
    %25 = vector.broadcast %24 : vector<1x32xf32> to vector<16x32xf32>
    %26 = arith.addf %23, %25 : vector<16x32xf32>
    %c0_16 = arith.constant 0 : index
    %c0_17 = arith.constant 0 : index
    %c0_18 = arith.constant 0 : index
    %27 = vector.load %arg5[%c0_16, %c0_17, %c0_18] : memref<4x32x32xf32, #tpu.memory_space<vmem>>, vector<1x32x32xf32>
    %28 = vector.shape_cast %27 : vector<1x32x32xf32> to vector<32x32xf32>
    %cst_19 = arith.constant dense<0.000000e+00> : vector<16x32xf32>
    %29 = tpu.matmul %26, %28, %cst_19 {dimension_numbers = #tpu.dot_dimension_numbers<[1], [0], [0], [1], [0, 0, 1, 1], [], []>} : vector<16x32xf32>, vector<32x32xf32>, vector<16x32xf32> -> vector<16x32xf32>
    %c0_20 = arith.constant 0 : index
    %c0_21 = arith.constant 0 : index
    %c0_22 = arith.constant 0 : index
    %30 = vector.load %arg7[%c0_20, %c0_21, %c0_22] : memref<4x1x32xf32, #tpu.memory_space<vmem>>, vector<1x1x32xf32>
    %31 = vector.shape_cast %30 : vector<1x1x32xf32> to vector<1x32xf32>
    %32 = vector.broadcast %31 : vector<1x32xf32> to vector<16x32xf32>
    %33 = arith.addf %29, %32 : vector<16x32xf32>
    %c1_23 = arith.constant 1 : index
    %c0_24 = arith.constant 0 : index
    %c0_25 = arith.constant 0 : index
    %34 = vector.load %arg5[%c1_23, %c0_24, %c0_25] : memref<4x32x32xf32, #tpu.memory_space<vmem>>, vector<1x32x32xf32>
    %35 = vector.shape_cast %34 : vector<1x32x32xf32> to vector<32x32xf32>
    %cst_26 = arith.constant dense<0.000000e+00> : vector<16x32xf32>
    %36 = tpu.matmul %26, %35, %cst_26 {dimension_numbers = #tpu.dot_dimension_numbers<[1], [0], [0], [1], [0, 0, 1, 1], [], []>} : vector<16x32xf32>, vector<32x32xf32>, vector<16x32xf32> -> vector<16x32xf32>
    %c1_27 = arith.constant 1 : index
    %c0_28 = arith.constant 0 : index
    %c0_29 = arith.constant 0 : index
    %37 = vector.load %arg7[%c1_27, %c0_28, %c0_29] : memref<4x1x32xf32, #tpu.memory_space<vmem>>, vector<1x1x32xf32>
    %38 = vector.shape_cast %37 : vector<1x1x32xf32> to vector<1x32xf32>
    %39 = vector.broadcast %38 : vector<1x32xf32> to vector<16x32xf32>
    %40 = arith.addf %36, %39 : vector<16x32xf32>
    %c2_30 = arith.constant 2 : index
    %c0_31 = arith.constant 0 : index
    %c0_32 = arith.constant 0 : index
    %41 = vector.load %arg5[%c2_30, %c0_31, %c0_32] : memref<4x32x32xf32, #tpu.memory_space<vmem>>, vector<1x32x32xf32>
    %42 = vector.shape_cast %41 : vector<1x32x32xf32> to vector<32x32xf32>
    %cst_33 = arith.constant dense<0.000000e+00> : vector<16x32xf32>
    %43 = tpu.matmul %26, %42, %cst_33 {dimension_numbers = #tpu.dot_dimension_numbers<[1], [0], [0], [1], [0, 0, 1, 1], [], []>} : vector<16x32xf32>, vector<32x32xf32>, vector<16x32xf32> -> vector<16x32xf32>
    %c2_34 = arith.constant 2 : index
    %c0_35 = arith.constant 0 : index
    %c0_36 = arith.constant 0 : index
    %44 = vector.load %arg7[%c2_34, %c0_35, %c0_36] : memref<4x1x32xf32, #tpu.memory_space<vmem>>, vector<1x1x32xf32>
    %45 = vector.shape_cast %44 : vector<1x1x32xf32> to vector<1x32xf32>
    %46 = vector.broadcast %45 : vector<1x32xf32> to vector<16x32xf32>
    %47 = arith.addf %43, %46 : vector<16x32xf32>
    %c3 = arith.constant 3 : index
    %c0_37 = arith.constant 0 : index
    %c0_38 = arith.constant 0 : index
    %48 = vector.load %arg5[%c3, %c0_37, %c0_38] : memref<4x32x32xf32, #tpu.memory_space<vmem>>, vector<1x32x32xf32>
    %49 = vector.shape_cast %48 : vector<1x32x32xf32> to vector<32x32xf32>
    %cst_39 = arith.constant dense<0.000000e+00> : vector<16x32xf32>
    %50 = tpu.matmul %26, %49, %cst_39 {dimension_numbers = #tpu.dot_dimension_numbers<[1], [0], [0], [1], [0, 0, 1, 1], [], []>} : vector<16x32xf32>, vector<32x32xf32>, vector<16x32xf32> -> vector<16x32xf32>
    %c3_40 = arith.constant 3 : index
    %c0_41 = arith.constant 0 : index
    %c0_42 = arith.constant 0 : index
    %51 = vector.load %arg7[%c3_40, %c0_41, %c0_42] : memref<4x1x32xf32, #tpu.memory_space<vmem>>, vector<1x1x32xf32>
    %52 = vector.shape_cast %51 : vector<1x1x32xf32> to vector<1x32xf32>
    %53 = vector.broadcast %52 : vector<1x32xf32> to vector<16x32xf32>
    %54 = arith.addf %50, %53 : vector<16x32xf32>
    %c0_43 = arith.constant 0 : index
    %c0_44 = arith.constant 0 : index
    %c0_45 = arith.constant 0 : index
    %55 = vector.load %arg6[%c0_43, %c0_44, %c0_45] : memref<4x32x32xf32, #tpu.memory_space<vmem>>, vector<1x32x32xf32>
    %56 = vector.shape_cast %55 : vector<1x32x32xf32> to vector<32x32xf32>
    %c1_46 = arith.constant 1 : index
    %c0_47 = arith.constant 0 : index
    %c0_48 = arith.constant 0 : index
    %57 = vector.load %arg6[%c1_46, %c0_47, %c0_48] : memref<4x32x32xf32, #tpu.memory_space<vmem>>, vector<1x32x32xf32>
    %58 = vector.shape_cast %57 : vector<1x32x32xf32> to vector<32x32xf32>
    %c2_49 = arith.constant 2 : index
    %c0_50 = arith.constant 0 : index
    %c0_51 = arith.constant 0 : index
    %59 = vector.load %arg6[%c2_49, %c0_50, %c0_51] : memref<4x32x32xf32, #tpu.memory_space<vmem>>, vector<1x32x32xf32>
    %60 = vector.shape_cast %59 : vector<1x32x32xf32> to vector<32x32xf32>
    %c3_52 = arith.constant 3 : index
    %c0_53 = arith.constant 0 : index
    %c0_54 = arith.constant 0 : index
    %61 = vector.load %arg6[%c3_52, %c0_53, %c0_54] : memref<4x32x32xf32, #tpu.memory_space<vmem>>, vector<1x32x32xf32>
    %62 = vector.shape_cast %61 : vector<1x32x32xf32> to vector<32x32xf32>
    %63 = tpu.iota {dimensions = array<i32: 0>} : vector<2x32xi32>
    %c0_i32 = arith.constant 0 : i32
    %64 = vector.broadcast %c0_i32 : i32 to vector<2x32xi32>
    %c0_i32_55 = arith.constant 0 : i32
    %65 = vector.broadcast %c0_i32_55 : i32 to vector<2x32xi32>
    %66 = arith.cmpi eq, %63, %65 : vector<2x32xi32>
    %c0_56 = arith.constant 0 : index
    %67 = memref.load %arg0[%c0_56] : memref<2xi32, #tpu.memory_space<smem>>
    %68 = vector.broadcast %67 : i32 to vector<2x32xi32>
    %69 = arith.select %66, %68, %64 : vector<2x32xi1>, vector<2x32xi32>
    %c1_i32 = arith.constant 1 : i32
    %70 = vector.broadcast %c1_i32 : i32 to vector<2x32xi32>
    %71 = arith.cmpi eq, %63, %70 : vector<2x32xi32>
    %c1_57 = arith.constant 1 : index
    %72 = memref.load %arg0[%c1_57] : memref<2xi32, #tpu.memory_space<smem>>
    %73 = vector.broadcast %72 : i32 to vector<2x32xi32>
    %74 = arith.select %71, %73, %69 : vector<2x32xi1>, vector<2x32xi32>
    %cst_58 = arith.constant 0.000000e+00 : f32
    %75 = vector.broadcast %cst_58 : f32 to vector<2x32xf32>
    %cst_59 = arith.constant 0.000000e+00 : f32
    %76 = vector.broadcast %cst_59 : f32 to vector<2x32xf32>
    %cst_60 = arith.constant 0.000000e+00 : f32
    %77 = vector.broadcast %cst_60 : f32 to vector<2x32xf32>
    %78 = vector.extract_strided_slice %33 {offsets = [0, 0], sizes = [2, 32], strides = [1, 1]} : vector<16x32xf32> to vector<2x32xf32>
    %cst_61 = arith.constant dense<0.000000e+00> : vector<2x32xf32>
    %79 = tpu.matmul %75, %56, %cst_61 {dimension_numbers = #tpu.dot_dimension_numbers<[1], [0], [0], [1], [0, 0, 1, 1], [], []>} : vector<2x32xf32>, vector<32x32xf32>, vector<2x32xf32> -> vector<2x32xf32>
    %80 = arith.addf %78, %79 : vector<2x32xf32>
    %81 = vector.extract_strided_slice %40 {offsets = [0, 0], sizes = [2, 32], strides = [1, 1]} : vector<16x32xf32> to vector<2x32xf32>
    %cst_62 = arith.constant dense<0.000000e+00> : vector<2x32xf32>
    %82 = tpu.matmul %75, %58, %cst_62 {dimension_numbers = #tpu.dot_dimension_numbers<[1], [0], [0], [1], [0, 0, 1, 1], [], []>} : vector<2x32xf32>, vector<32x32xf32>, vector<2x32xf32> -> vector<2x32xf32>
    %83 = arith.addf %81, %82 : vector<2x32xf32>
    %84 = vector.extract_strided_slice %47 {offsets = [0, 0], sizes = [2, 32], strides = [1, 1]} : vector<16x32xf32> to vector<2x32xf32>
    %cst_63 = arith.constant dense<0.000000e+00> : vector<2x32xf32>
    %85 = tpu.matmul %75, %60, %cst_63 {dimension_numbers = #tpu.dot_dimension_numbers<[1], [0], [0], [1], [0, 0, 1, 1], [], []>} : vector<2x32xf32>, vector<32x32xf32>, vector<2x32xf32> -> vector<2x32xf32>
    %86 = arith.addf %84, %85 : vector<2x32xf32>
    %87 = vector.extract_strided_slice %54 {offsets = [0, 0], sizes = [2, 32], strides = [1, 1]} : vector<16x32xf32> to vector<2x32xf32>
    %cst_64 = arith.constant dense<0.000000e+00> : vector<2x32xf32>
    %88 = tpu.matmul %75, %62, %cst_64 {dimension_numbers = #tpu.dot_dimension_numbers<[1], [0], [0], [1], [0, 0, 1, 1], [], []>} : vector<2x32xf32>, vector<32x32xf32>, vector<2x32xf32> -> vector<2x32xf32>
    %89 = arith.addf %87, %88 : vector<2x32xf32>
    %90 = arith.negf %80 : vector<2x32xf32>
    %91 = math.exp %90 : vector<2x32xf32>
    %cst_65 = arith.constant 1.000000e+00 : f32
    %92 = vector.broadcast %cst_65 : f32 to vector<2x32xf32>
    %93 = arith.addf %92, %91 : vector<2x32xf32>
    %94 = arith.divf %92, %93 : vector<2x32xf32>
    %95 = arith.negf %83 : vector<2x32xf32>
    %96 = math.exp %95 : vector<2x32xf32>
    %cst_66 = arith.constant 1.000000e+00 : f32
    %97 = vector.broadcast %cst_66 : f32 to vector<2x32xf32>
    %98 = arith.addf %97, %96 : vector<2x32xf32>
    %99 = arith.divf %97, %98 : vector<2x32xf32>
    %100 = math.tanh %86 : vector<2x32xf32>
    %101 = arith.negf %89 : vector<2x32xf32>
    %102 = math.exp %101 : vector<2x32xf32>
    %cst_67 = arith.constant 1.000000e+00 : f32
    %103 = vector.broadcast %cst_67 : f32 to vector<2x32xf32>
    %104 = arith.addf %103, %102 : vector<2x32xf32>
    %105 = arith.divf %103, %104 : vector<2x32xf32>
    %106 = arith.mulf %99, %76 : vector<2x32xf32>
    %107 = arith.mulf %94, %100 : vector<2x32xf32>
    %108 = arith.addf %106, %107 : vector<2x32xf32>
    %109 = math.tanh %108 : vector<2x32xf32>
    %110 = arith.mulf %105, %109 : vector<2x32xf32>
    %c0_i32_68 = arith.constant 0 : i32
    %111 = vector.broadcast %c0_i32_68 : i32 to vector<2x32xi32>
    %112 = arith.cmpi sgt, %74, %111 : vector<2x32xi32>
    %cst_69 = arith.constant 0.000000e+00 : f32
    %113 = vector.broadcast %cst_69 : f32 to vector<2x32xf32>
    %114 = arith.select %112, %110, %113 : vector<2x32xi1>, vector<2x32xf32>
    %115 = arith.addf %77, %114 : vector<2x32xf32>
    %116 = vector.extract_strided_slice %33 {offsets = [2, 0], sizes = [2, 32], strides = [1, 1]} : vector<16x32xf32> to vector<2x32xf32>
    %cst_70 = arith.constant dense<0.000000e+00> : vector<2x32xf32>
    %117 = tpu.matmul %110, %56, %cst_70 {dimension_numbers = #tpu.dot_dimension_numbers<[1], [0], [0], [1], [0, 0, 1, 1], [], []>} : vector<2x32xf32>, vector<32x32xf32>, vector<2x32xf32> -> vector<2x32xf32>
    %118 = arith.addf %116, %117 : vector<2x32xf32>
    %119 = vector.extract_strided_slice %40 {offsets = [2, 0], sizes = [2, 32], strides = [1, 1]} : vector<16x32xf32> to vector<2x32xf32>
    %cst_71 = arith.constant dense<0.000000e+00> : vector<2x32xf32>
    %120 = tpu.matmul %110, %58, %cst_71 {dimension_numbers = #tpu.dot_dimension_numbers<[1], [0], [0], [1], [0, 0, 1, 1], [], []>} : vector<2x32xf32>, vector<32x32xf32>, vector<2x32xf32> -> vector<2x32xf32>
    %121 = arith.addf %119, %120 : vector<2x32xf32>
    %122 = vector.extract_strided_slice %47 {offsets = [2, 0], sizes = [2, 32], strides = [1, 1]} : vector<16x32xf32> to vector<2x32xf32>
    %cst_72 = arith.constant dense<0.000000e+00> : vector<2x32xf32>
    %123 = tpu.matmul %110, %60, %cst_72 {dimension_numbers = #tpu.dot_dimension_numbers<[1], [0], [0], [1], [0, 0, 1, 1], [], []>} : vector<2x32xf32>, vector<32x32xf32>, vector<2x32xf32> -> vector<2x32xf32>
    %124 = arith.addf %122, %123 : vector<2x32xf32>
    %125 = vector.extract_strided_slice %54 {offsets = [2, 0], sizes = [2, 32], strides = [1, 1]} : vector<16x32xf32> to vector<2x32xf32>
    %cst_73 = arith.constant dense<0.000000e+00> : vector<2x32xf32>
    %126 = tpu.matmul %110, %62, %cst_73 {dimension_numbers = #tpu.dot_dimension_numbers<[1], [0], [0], [1], [0, 0, 1, 1], [], []>} : vector<2x32xf32>, vector<32x32xf32>, vector<2x32xf32> -> vector<2x32xf32>
    %127 = arith.addf %125, %126 : vector<2x32xf32>
    %128 = arith.negf %118 : vector<2x32xf32>
    %129 = math.exp %128 : vector<2x32xf32>
    %cst_74 = arith.constant 1.000000e+00 : f32
    %130 = vector.broadcast %cst_74 : f32 to vector<2x32xf32>
    %131 = arith.addf %130, %129 : vector<2x32xf32>
    %132 = arith.divf %130, %131 : vector<2x32xf32>
    %133 = arith.negf %121 : vector<2x32xf32>
    %134 = math.exp %133 : vector<2x32xf32>
    %cst_75 = arith.constant 1.000000e+00 : f32
    %135 = vector.broadcast %cst_75 : f32 to vector<2x32xf32>
    %136 = arith.addf %135, %134 : vector<2x32xf32>
    %137 = arith.divf %135, %136 : vector<2x32xf32>
    %138 = math.tanh %124 : vector<2x32xf32>
    %139 = arith.negf %127 : vector<2x32xf32>
    %140 = math.exp %139 : vector<2x32xf32>
    %cst_76 = arith.constant 1.000000e+00 : f32
    %141 = vector.broadcast %cst_76 : f32 to vector<2x32xf32>
    %142 = arith.addf %141, %140 : vector<2x32xf32>
    %143 = arith.divf %141, %142 : vector<2x32xf32>
    %144 = arith.mulf %137, %108 : vector<2x32xf32>
    %145 = arith.mulf %132, %138 : vector<2x32xf32>
    %146 = arith.addf %144, %145 : vector<2x32xf32>
    %147 = math.tanh %146 : vector<2x32xf32>
    %148 = arith.mulf %143, %147 : vector<2x32xf32>
    %c1_i32_77 = arith.constant 1 : i32
    %149 = vector.broadcast %c1_i32_77 : i32 to vector<2x32xi32>
    %150 = arith.cmpi sgt, %74, %149 : vector<2x32xi32>
    %cst_78 = arith.constant 0.000000e+00 : f32
    %151 = vector.broadcast %cst_78 : f32 to vector<2x32xf32>
    %152 = arith.select %150, %148, %151 : vector<2x32xi1>, vector<2x32xf32>
    %153 = arith.addf %115, %152 : vector<2x32xf32>
    %154 = vector.extract_strided_slice %33 {offsets = [4, 0], sizes = [2, 32], strides = [1, 1]} : vector<16x32xf32> to vector<2x32xf32>
    %cst_79 = arith.constant dense<0.000000e+00> : vector<2x32xf32>
    %155 = tpu.matmul %148, %56, %cst_79 {dimension_numbers = #tpu.dot_dimension_numbers<[1], [0], [0], [1], [0, 0, 1, 1], [], []>} : vector<2x32xf32>, vector<32x32xf32>, vector<2x32xf32> -> vector<2x32xf32>
    %156 = arith.addf %154, %155 : vector<2x32xf32>
    %157 = vector.extract_strided_slice %40 {offsets = [4, 0], sizes = [2, 32], strides = [1, 1]} : vector<16x32xf32> to vector<2x32xf32>
    %cst_80 = arith.constant dense<0.000000e+00> : vector<2x32xf32>
    %158 = tpu.matmul %148, %58, %cst_80 {dimension_numbers = #tpu.dot_dimension_numbers<[1], [0], [0], [1], [0, 0, 1, 1], [], []>} : vector<2x32xf32>, vector<32x32xf32>, vector<2x32xf32> -> vector<2x32xf32>
    %159 = arith.addf %157, %158 : vector<2x32xf32>
    %160 = vector.extract_strided_slice %47 {offsets = [4, 0], sizes = [2, 32], strides = [1, 1]} : vector<16x32xf32> to vector<2x32xf32>
    %cst_81 = arith.constant dense<0.000000e+00> : vector<2x32xf32>
    %161 = tpu.matmul %148, %60, %cst_81 {dimension_numbers = #tpu.dot_dimension_numbers<[1], [0], [0], [1], [0, 0, 1, 1], [], []>} : vector<2x32xf32>, vector<32x32xf32>, vector<2x32xf32> -> vector<2x32xf32>
    %162 = arith.addf %160, %161 : vector<2x32xf32>
    %163 = vector.extract_strided_slice %54 {offsets = [4, 0], sizes = [2, 32], strides = [1, 1]} : vector<16x32xf32> to vector<2x32xf32>
    %cst_82 = arith.constant dense<0.000000e+00> : vector<2x32xf32>
    %164 = tpu.matmul %148, %62, %cst_82 {dimension_numbers = #tpu.dot_dimension_numbers<[1], [0], [0], [1], [0, 0, 1, 1], [], []>} : vector<2x32xf32>, vector<32x32xf32>, vector<2x32xf32> -> vector<2x32xf32>
    %165 = arith.addf %163, %164 : vector<2x32xf32>
    %166 = arith.negf %156 : vector<2x32xf32>
    %167 = math.exp %166 : vector<2x32xf32>
    %cst_83 = arith.constant 1.000000e+00 : f32
    %168 = vector.broadcast %cst_83 : f32 to vector<2x32xf32>
    %169 = arith.addf %168, %167 : vector<2x32xf32>
    %170 = arith.divf %168, %169 : vector<2x32xf32>
    %171 = arith.negf %159 : vector<2x32xf32>
    %172 = math.exp %171 : vector<2x32xf32>
    %cst_84 = arith.constant 1.000000e+00 : f32
    %173 = vector.broadcast %cst_84 : f32 to vector<2x32xf32>
    %174 = arith.addf %173, %172 : vector<2x32xf32>
    %175 = arith.divf %173, %174 : vector<2x32xf32>
    %176 = math.tanh %162 : vector<2x32xf32>
    %177 = arith.negf %165 : vector<2x32xf32>
    %178 = math.exp %177 : vector<2x32xf32>
    %cst_85 = arith.constant 1.000000e+00 : f32
    %179 = vector.broadcast %cst_85 : f32 to vector<2x32xf32>
    %180 = arith.addf %179, %178 : vector<2x32xf32>
    %181 = arith.divf %179, %180 : vector<2x32xf32>
    %182 = arith.mulf %175, %146 : vector<2x32xf32>
    %183 = arith.mulf %170, %176 : vector<2x32xf32>
    %184 = arith.addf %182, %183 : vector<2x32xf32>
    %185 = math.tanh %184 : vector<2x32xf32>
    %186 = arith.mulf %181, %185 : vector<2x32xf32>
    %c2_i32 = arith.constant 2 : i32
    %187 = vector.broadcast %c2_i32 : i32 to vector<2x32xi32>
    %188 = arith.cmpi sgt, %74, %187 : vector<2x32xi32>
    %cst_86 = arith.constant 0.000000e+00 : f32
    %189 = vector.broadcast %cst_86 : f32 to vector<2x32xf32>
    %190 = arith.select %188, %186, %189 : vector<2x32xi1>, vector<2x32xf32>
    %191 = arith.addf %153, %190 : vector<2x32xf32>
    %192 = vector.extract_strided_slice %33 {offsets = [6, 0], sizes = [2, 32], strides = [1, 1]} : vector<16x32xf32> to vector<2x32xf32>
    %cst_87 = arith.constant dense<0.000000e+00> : vector<2x32xf32>
    %193 = tpu.matmul %186, %56, %cst_87 {dimension_numbers = #tpu.dot_dimension_numbers<[1], [0], [0], [1], [0, 0, 1, 1], [], []>} : vector<2x32xf32>, vector<32x32xf32>, vector<2x32xf32> -> vector<2x32xf32>
    %194 = arith.addf %192, %193 : vector<2x32xf32>
    %195 = vector.extract_strided_slice %40 {offsets = [6, 0], sizes = [2, 32], strides = [1, 1]} : vector<16x32xf32> to vector<2x32xf32>
    %cst_88 = arith.constant dense<0.000000e+00> : vector<2x32xf32>
    %196 = tpu.matmul %186, %58, %cst_88 {dimension_numbers = #tpu.dot_dimension_numbers<[1], [0], [0], [1], [0, 0, 1, 1], [], []>} : vector<2x32xf32>, vector<32x32xf32>, vector<2x32xf32> -> vector<2x32xf32>
    %197 = arith.addf %195, %196 : vector<2x32xf32>
    %198 = vector.extract_strided_slice %47 {offsets = [6, 0], sizes = [2, 32], strides = [1, 1]} : vector<16x32xf32> to vector<2x32xf32>
    %cst_89 = arith.constant dense<0.000000e+00> : vector<2x32xf32>
    %199 = tpu.matmul %186, %60, %cst_89 {dimension_numbers = #tpu.dot_dimension_numbers<[1], [0], [0], [1], [0, 0, 1, 1], [], []>} : vector<2x32xf32>, vector<32x32xf32>, vector<2x32xf32> -> vector<2x32xf32>
    %200 = arith.addf %198, %199 : vector<2x32xf32>
    %201 = vector.extract_strided_slice %54 {offsets = [6, 0], sizes = [2, 32], strides = [1, 1]} : vector<16x32xf32> to vector<2x32xf32>
    %cst_90 = arith.constant dense<0.000000e+00> : vector<2x32xf32>
    %202 = tpu.matmul %186, %62, %cst_90 {dimension_numbers = #tpu.dot_dimension_numbers<[1], [0], [0], [1], [0, 0, 1, 1], [], []>} : vector<2x32xf32>, vector<32x32xf32>, vector<2x32xf32> -> vector<2x32xf32>
    %203 = arith.addf %201, %202 : vector<2x32xf32>
    %204 = arith.negf %194 : vector<2x32xf32>
    %205 = math.exp %204 : vector<2x32xf32>
    %cst_91 = arith.constant 1.000000e+00 : f32
    %206 = vector.broadcast %cst_91 : f32 to vector<2x32xf32>
    %207 = arith.addf %206, %205 : vector<2x32xf32>
    %208 = arith.divf %206, %207 : vector<2x32xf32>
    %209 = arith.negf %197 : vector<2x32xf32>
    %210 = math.exp %209 : vector<2x32xf32>
    %cst_92 = arith.constant 1.000000e+00 : f32
    %211 = vector.broadcast %cst_92 : f32 to vector<2x32xf32>
    %212 = arith.addf %211, %210 : vector<2x32xf32>
    %213 = arith.divf %211, %212 : vector<2x32xf32>
    %214 = math.tanh %200 : vector<2x32xf32>
    %215 = arith.negf %203 : vector<2x32xf32>
    %216 = math.exp %215 : vector<2x32xf32>
    %cst_93 = arith.constant 1.000000e+00 : f32
    %217 = vector.broadcast %cst_93 : f32 to vector<2x32xf32>
    %218 = arith.addf %217, %216 : vector<2x32xf32>
    %219 = arith.divf %217, %218 : vector<2x32xf32>
    %220 = arith.mulf %213, %184 : vector<2x32xf32>
    %221 = arith.mulf %208, %214 : vector<2x32xf32>
    %222 = arith.addf %220, %221 : vector<2x32xf32>
    %223 = math.tanh %222 : vector<2x32xf32>
    %224 = arith.mulf %219, %223 : vector<2x32xf32>
    %c3_i32 = arith.constant 3 : i32
    %225 = vector.broadcast %c3_i32 : i32 to vector<2x32xi32>
    %226 = arith.cmpi sgt, %74, %225 : vector<2x32xi32>
    %cst_94 = arith.constant 0.000000e+00 : f32
    %227 = vector.broadcast %cst_94 : f32 to vector<2x32xf32>
    %228 = arith.select %226, %224, %227 : vector<2x32xi1>, vector<2x32xf32>
    %229 = arith.addf %191, %228 : vector<2x32xf32>
    %230 = vector.extract_strided_slice %33 {offsets = [8, 0], sizes = [2, 32], strides = [1, 1]} : vector<16x32xf32> to vector<2x32xf32>
    %cst_95 = arith.constant dense<0.000000e+00> : vector<2x32xf32>
    %231 = tpu.matmul %224, %56, %cst_95 {dimension_numbers = #tpu.dot_dimension_numbers<[1], [0], [0], [1], [0, 0, 1, 1], [], []>} : vector<2x32xf32>, vector<32x32xf32>, vector<2x32xf32> -> vector<2x32xf32>
    %232 = arith.addf %230, %231 : vector<2x32xf32>
    %233 = vector.extract_strided_slice %40 {offsets = [8, 0], sizes = [2, 32], strides = [1, 1]} : vector<16x32xf32> to vector<2x32xf32>
    %cst_96 = arith.constant dense<0.000000e+00> : vector<2x32xf32>
    %234 = tpu.matmul %224, %58, %cst_96 {dimension_numbers = #tpu.dot_dimension_numbers<[1], [0], [0], [1], [0, 0, 1, 1], [], []>} : vector<2x32xf32>, vector<32x32xf32>, vector<2x32xf32> -> vector<2x32xf32>
    %235 = arith.addf %233, %234 : vector<2x32xf32>
    %236 = vector.extract_strided_slice %47 {offsets = [8, 0], sizes = [2, 32], strides = [1, 1]} : vector<16x32xf32> to vector<2x32xf32>
    %cst_97 = arith.constant dense<0.000000e+00> : vector<2x32xf32>
    %237 = tpu.matmul %224, %60, %cst_97 {dimension_numbers = #tpu.dot_dimension_numbers<[1], [0], [0], [1], [0, 0, 1, 1], [], []>} : vector<2x32xf32>, vector<32x32xf32>, vector<2x32xf32> -> vector<2x32xf32>
    %238 = arith.addf %236, %237 : vector<2x32xf32>
    %239 = vector.extract_strided_slice %54 {offsets = [8, 0], sizes = [2, 32], strides = [1, 1]} : vector<16x32xf32> to vector<2x32xf32>
    %cst_98 = arith.constant dense<0.000000e+00> : vector<2x32xf32>
    %240 = tpu.matmul %224, %62, %cst_98 {dimension_numbers = #tpu.dot_dimension_numbers<[1], [0], [0], [1], [0, 0, 1, 1], [], []>} : vector<2x32xf32>, vector<32x32xf32>, vector<2x32xf32> -> vector<2x32xf32>
    %241 = arith.addf %239, %240 : vector<2x32xf32>
    %242 = arith.negf %232 : vector<2x32xf32>
    %243 = math.exp %242 : vector<2x32xf32>
    %cst_99 = arith.constant 1.000000e+00 : f32
    %244 = vector.broadcast %cst_99 : f32 to vector<2x32xf32>
    %245 = arith.addf %244, %243 : vector<2x32xf32>
    %246 = arith.divf %244, %245 : vector<2x32xf32>
    %247 = arith.negf %235 : vector<2x32xf32>
    %248 = math.exp %247 : vector<2x32xf32>
    %cst_100 = arith.constant 1.000000e+00 : f32
    %249 = vector.broadcast %cst_100 : f32 to vector<2x32xf32>
    %250 = arith.addf %249, %248 : vector<2x32xf32>
    %251 = arith.divf %249, %250 : vector<2x32xf32>
    %252 = math.tanh %238 : vector<2x32xf32>
    %253 = arith.negf %241 : vector<2x32xf32>
    %254 = math.exp %253 : vector<2x32xf32>
    %cst_101 = arith.constant 1.000000e+00 : f32
    %255 = vector.broadcast %cst_101 : f32 to vector<2x32xf32>
    %256 = arith.addf %255, %254 : vector<2x32xf32>
    %257 = arith.divf %255, %256 : vector<2x32xf32>
    %258 = arith.mulf %251, %222 : vector<2x32xf32>
    %259 = arith.mulf %246, %252 : vector<2x32xf32>
    %260 = arith.addf %258, %259 : vector<2x32xf32>
    %261 = math.tanh %260 : vector<2x32xf32>
    %262 = arith.mulf %257, %261 : vector<2x32xf32>
    %c4_i32 = arith.constant 4 : i32
    %263 = vector.broadcast %c4_i32 : i32 to vector<2x32xi32>
    %264 = arith.cmpi sgt, %74, %263 : vector<2x32xi32>
    %cst_102 = arith.constant 0.000000e+00 : f32
    %265 = vector.broadcast %cst_102 : f32 to vector<2x32xf32>
    %266 = arith.select %264, %262, %265 : vector<2x32xi1>, vector<2x32xf32>
    %267 = arith.addf %229, %266 : vector<2x32xf32>
    %268 = vector.extract_strided_slice %33 {offsets = [10, 0], sizes = [2, 32], strides = [1, 1]} : vector<16x32xf32> to vector<2x32xf32>
    %cst_103 = arith.constant dense<0.000000e+00> : vector<2x32xf32>
    %269 = tpu.matmul %262, %56, %cst_103 {dimension_numbers = #tpu.dot_dimension_numbers<[1], [0], [0], [1], [0, 0, 1, 1], [], []>} : vector<2x32xf32>, vector<32x32xf32>, vector<2x32xf32> -> vector<2x32xf32>
    %270 = arith.addf %268, %269 : vector<2x32xf32>
    %271 = vector.extract_strided_slice %40 {offsets = [10, 0], sizes = [2, 32], strides = [1, 1]} : vector<16x32xf32> to vector<2x32xf32>
    %cst_104 = arith.constant dense<0.000000e+00> : vector<2x32xf32>
    %272 = tpu.matmul %262, %58, %cst_104 {dimension_numbers = #tpu.dot_dimension_numbers<[1], [0], [0], [1], [0, 0, 1, 1], [], []>} : vector<2x32xf32>, vector<32x32xf32>, vector<2x32xf32> -> vector<2x32xf32>
    %273 = arith.addf %271, %272 : vector<2x32xf32>
    %274 = vector.extract_strided_slice %47 {offsets = [10, 0], sizes = [2, 32], strides = [1, 1]} : vector<16x32xf32> to vector<2x32xf32>
    %cst_105 = arith.constant dense<0.000000e+00> : vector<2x32xf32>
    %275 = tpu.matmul %262, %60, %cst_105 {dimension_numbers = #tpu.dot_dimension_numbers<[1], [0], [0], [1], [0, 0, 1, 1], [], []>} : vector<2x32xf32>, vector<32x32xf32>, vector<2x32xf32> -> vector<2x32xf32>
    %276 = arith.addf %274, %275 : vector<2x32xf32>
    %277 = vector.extract_strided_slice %54 {offsets = [10, 0], sizes = [2, 32], strides = [1, 1]} : vector<16x32xf32> to vector<2x32xf32>
    %cst_106 = arith.constant dense<0.000000e+00> : vector<2x32xf32>
    %278 = tpu.matmul %262, %62, %cst_106 {dimension_numbers = #tpu.dot_dimension_numbers<[1], [0], [0], [1], [0, 0, 1, 1], [], []>} : vector<2x32xf32>, vector<32x32xf32>, vector<2x32xf32> -> vector<2x32xf32>
    %279 = arith.addf %277, %278 : vector<2x32xf32>
    %280 = arith.negf %270 : vector<2x32xf32>
    %281 = math.exp %280 : vector<2x32xf32>
    %cst_107 = arith.constant 1.000000e+00 : f32
    %282 = vector.broadcast %cst_107 : f32 to vector<2x32xf32>
    %283 = arith.addf %282, %281 : vector<2x32xf32>
    %284 = arith.divf %282, %283 : vector<2x32xf32>
    %285 = arith.negf %273 : vector<2x32xf32>
    %286 = math.exp %285 : vector<2x32xf32>
    %cst_108 = arith.constant 1.000000e+00 : f32
    %287 = vector.broadcast %cst_108 : f32 to vector<2x32xf32>
    %288 = arith.addf %287, %286 : vector<2x32xf32>
    %289 = arith.divf %287, %288 : vector<2x32xf32>
    %290 = math.tanh %276 : vector<2x32xf32>
    %291 = arith.negf %279 : vector<2x32xf32>
    %292 = math.exp %291 : vector<2x32xf32>
    %cst_109 = arith.constant 1.000000e+00 : f32
    %293 = vector.broadcast %cst_109 : f32 to vector<2x32xf32>
    %294 = arith.addf %293, %292 : vector<2x32xf32>
    %295 = arith.divf %293, %294 : vector<2x32xf32>
    %296 = arith.mulf %289, %260 : vector<2x32xf32>
    %297 = arith.mulf %284, %290 : vector<2x32xf32>
    %298 = arith.addf %296, %297 : vector<2x32xf32>
    %299 = math.tanh %298 : vector<2x32xf32>
    %300 = arith.mulf %295, %299 : vector<2x32xf32>
    %c5_i32 = arith.constant 5 : i32
    %301 = vector.broadcast %c5_i32 : i32 to vector<2x32xi32>
    %302 = arith.cmpi sgt, %74, %301 : vector<2x32xi32>
    %cst_110 = arith.constant 0.000000e+00 : f32
    %303 = vector.broadcast %cst_110 : f32 to vector<2x32xf32>
    %304 = arith.select %302, %300, %303 : vector<2x32xi1>, vector<2x32xf32>
    %305 = arith.addf %267, %304 : vector<2x32xf32>
    %306 = vector.extract_strided_slice %33 {offsets = [12, 0], sizes = [2, 32], strides = [1, 1]} : vector<16x32xf32> to vector<2x32xf32>
    %cst_111 = arith.constant dense<0.000000e+00> : vector<2x32xf32>
    %307 = tpu.matmul %300, %56, %cst_111 {dimension_numbers = #tpu.dot_dimension_numbers<[1], [0], [0], [1], [0, 0, 1, 1], [], []>} : vector<2x32xf32>, vector<32x32xf32>, vector<2x32xf32> -> vector<2x32xf32>
    %308 = arith.addf %306, %307 : vector<2x32xf32>
    %309 = vector.extract_strided_slice %40 {offsets = [12, 0], sizes = [2, 32], strides = [1, 1]} : vector<16x32xf32> to vector<2x32xf32>
    %cst_112 = arith.constant dense<0.000000e+00> : vector<2x32xf32>
    %310 = tpu.matmul %300, %58, %cst_112 {dimension_numbers = #tpu.dot_dimension_numbers<[1], [0], [0], [1], [0, 0, 1, 1], [], []>} : vector<2x32xf32>, vector<32x32xf32>, vector<2x32xf32> -> vector<2x32xf32>
    %311 = arith.addf %309, %310 : vector<2x32xf32>
    %312 = vector.extract_strided_slice %47 {offsets = [12, 0], sizes = [2, 32], strides = [1, 1]} : vector<16x32xf32> to vector<2x32xf32>
    %cst_113 = arith.constant dense<0.000000e+00> : vector<2x32xf32>
    %313 = tpu.matmul %300, %60, %cst_113 {dimension_numbers = #tpu.dot_dimension_numbers<[1], [0], [0], [1], [0, 0, 1, 1], [], []>} : vector<2x32xf32>, vector<32x32xf32>, vector<2x32xf32> -> vector<2x32xf32>
    %314 = arith.addf %312, %313 : vector<2x32xf32>
    %315 = vector.extract_strided_slice %54 {offsets = [12, 0], sizes = [2, 32], strides = [1, 1]} : vector<16x32xf32> to vector<2x32xf32>
    %cst_114 = arith.constant dense<0.000000e+00> : vector<2x32xf32>
    %316 = tpu.matmul %300, %62, %cst_114 {dimension_numbers = #tpu.dot_dimension_numbers<[1], [0], [0], [1], [0, 0, 1, 1], [], []>} : vector<2x32xf32>, vector<32x32xf32>, vector<2x32xf32> -> vector<2x32xf32>
    %317 = arith.addf %315, %316 : vector<2x32xf32>
    %318 = arith.negf %308 : vector<2x32xf32>
    %319 = math.exp %318 : vector<2x32xf32>
    %cst_115 = arith.constant 1.000000e+00 : f32
    %320 = vector.broadcast %cst_115 : f32 to vector<2x32xf32>
    %321 = arith.addf %320, %319 : vector<2x32xf32>
    %322 = arith.divf %320, %321 : vector<2x32xf32>
    %323 = arith.negf %311 : vector<2x32xf32>
    %324 = math.exp %323 : vector<2x32xf32>
    %cst_116 = arith.constant 1.000000e+00 : f32
    %325 = vector.broadcast %cst_116 : f32 to vector<2x32xf32>
    %326 = arith.addf %325, %324 : vector<2x32xf32>
    %327 = arith.divf %325, %326 : vector<2x32xf32>
    %328 = math.tanh %314 : vector<2x32xf32>
    %329 = arith.negf %317 : vector<2x32xf32>
    %330 = math.exp %329 : vector<2x32xf32>
    %cst_117 = arith.constant 1.000000e+00 : f32
    %331 = vector.broadcast %cst_117 : f32 to vector<2x32xf32>
    %332 = arith.addf %331, %330 : vector<2x32xf32>
    %333 = arith.divf %331, %332 : vector<2x32xf32>
    %334 = arith.mulf %327, %298 : vector<2x32xf32>
    %335 = arith.mulf %322, %328 : vector<2x32xf32>
    %336 = arith.addf %334, %335 : vector<2x32xf32>
    %337 = math.tanh %336 : vector<2x32xf32>
    %338 = arith.mulf %333, %337 : vector<2x32xf32>
    %c6_i32 = arith.constant 6 : i32
    %339 = vector.broadcast %c6_i32 : i32 to vector<2x32xi32>
    %340 = arith.cmpi sgt, %74, %339 : vector<2x32xi32>
    %cst_118 = arith.constant 0.000000e+00 : f32
    %341 = vector.broadcast %cst_118 : f32 to vector<2x32xf32>
    %342 = arith.select %340, %338, %341 : vector<2x32xi1>, vector<2x32xf32>
    %343 = arith.addf %305, %342 : vector<2x32xf32>
    %344 = vector.extract_strided_slice %33 {offsets = [14, 0], sizes = [2, 32], strides = [1, 1]} : vector<16x32xf32> to vector<2x32xf32>
    %cst_119 = arith.constant dense<0.000000e+00> : vector<2x32xf32>
    %345 = tpu.matmul %338, %56, %cst_119 {dimension_numbers = #tpu.dot_dimension_numbers<[1], [0], [0], [1], [0, 0, 1, 1], [], []>} : vector<2x32xf32>, vector<32x32xf32>, vector<2x32xf32> -> vector<2x32xf32>
    %346 = arith.addf %344, %345 : vector<2x32xf32>
    %347 = vector.extract_strided_slice %40 {offsets = [14, 0], sizes = [2, 32], strides = [1, 1]} : vector<16x32xf32> to vector<2x32xf32>
    %cst_120 = arith.constant dense<0.000000e+00> : vector<2x32xf32>
    %348 = tpu.matmul %338, %58, %cst_120 {dimension_numbers = #tpu.dot_dimension_numbers<[1], [0], [0], [1], [0, 0, 1, 1], [], []>} : vector<2x32xf32>, vector<32x32xf32>, vector<2x32xf32> -> vector<2x32xf32>
    %349 = arith.addf %347, %348 : vector<2x32xf32>
    %350 = vector.extract_strided_slice %47 {offsets = [14, 0], sizes = [2, 32], strides = [1, 1]} : vector<16x32xf32> to vector<2x32xf32>
    %cst_121 = arith.constant dense<0.000000e+00> : vector<2x32xf32>
    %351 = tpu.matmul %338, %60, %cst_121 {dimension_numbers = #tpu.dot_dimension_numbers<[1], [0], [0], [1], [0, 0, 1, 1], [], []>} : vector<2x32xf32>, vector<32x32xf32>, vector<2x32xf32> -> vector<2x32xf32>
    %352 = arith.addf %350, %351 : vector<2x32xf32>
    %353 = vector.extract_strided_slice %54 {offsets = [14, 0], sizes = [2, 32], strides = [1, 1]} : vector<16x32xf32> to vector<2x32xf32>
    %cst_122 = arith.constant dense<0.000000e+00> : vector<2x32xf32>
    %354 = tpu.matmul %338, %62, %cst_122 {dimension_numbers = #tpu.dot_dimension_numbers<[1], [0], [0], [1], [0, 0, 1, 1], [], []>} : vector<2x32xf32>, vector<32x32xf32>, vector<2x32xf32> -> vector<2x32xf32>
    %355 = arith.addf %353, %354 : vector<2x32xf32>
    %356 = arith.negf %346 : vector<2x32xf32>
    %357 = math.exp %356 : vector<2x32xf32>
    %cst_123 = arith.constant 1.000000e+00 : f32
    %358 = vector.broadcast %cst_123 : f32 to vector<2x32xf32>
    %359 = arith.addf %358, %357 : vector<2x32xf32>
    %360 = arith.divf %358, %359 : vector<2x32xf32>
    %361 = arith.negf %349 : vector<2x32xf32>
    %362 = math.exp %361 : vector<2x32xf32>
    %cst_124 = arith.constant 1.000000e+00 : f32
    %363 = vector.broadcast %cst_124 : f32 to vector<2x32xf32>
    %364 = arith.addf %363, %362 : vector<2x32xf32>
    %365 = arith.divf %363, %364 : vector<2x32xf32>
    %366 = math.tanh %352 : vector<2x32xf32>
    %367 = arith.negf %355 : vector<2x32xf32>
    %368 = math.exp %367 : vector<2x32xf32>
    %cst_125 = arith.constant 1.000000e+00 : f32
    %369 = vector.broadcast %cst_125 : f32 to vector<2x32xf32>
    %370 = arith.addf %369, %368 : vector<2x32xf32>
    %371 = arith.divf %369, %370 : vector<2x32xf32>
    %372 = arith.mulf %365, %336 : vector<2x32xf32>
    %373 = arith.mulf %360, %366 : vector<2x32xf32>
    %374 = arith.addf %372, %373 : vector<2x32xf32>
    %375 = math.tanh %374 : vector<2x32xf32>
    %376 = arith.mulf %371, %375 : vector<2x32xf32>
    %c7_i32 = arith.constant 7 : i32
    %377 = vector.broadcast %c7_i32 : i32 to vector<2x32xi32>
    %378 = arith.cmpi sgt, %74, %377 : vector<2x32xi32>
    %cst_126 = arith.constant 0.000000e+00 : f32
    %379 = vector.broadcast %cst_126 : f32 to vector<2x32xf32>
    %380 = arith.select %378, %376, %379 : vector<2x32xi1>, vector<2x32xf32>
    %381 = arith.addf %343, %380 : vector<2x32xf32>
    %c1_i32_127 = arith.constant 1 : i32
    %382 = vector.broadcast %c1_i32_127 : i32 to vector<2x32xi32>
    %383 = arith.maxsi %74, %382 : vector<2x32xi32>
    %384 = arith.sitofp %383 : vector<2x32xi32> to vector<2x32xf32>
    %cst_128 = arith.constant 1.000000e+00 : f32
    %385 = vector.broadcast %cst_128 : f32 to vector<2x32xf32>
    %386 = arith.divf %385, %384 : vector<2x32xf32>
    %387 = arith.mulf %381, %386 : vector<2x32xf32>
    %c0_129 = arith.constant 0 : index
    %c0_130 = arith.constant 0 : index
    %388 = vector.load %arg8[%c0_129, %c0_130] : memref<32x1xf32, #tpu.memory_space<vmem>>, vector<32x1xf32>
    %cst_131 = arith.constant dense<0.000000e+00> : vector<2x1xf32>
    %389 = tpu.matmul %387, %388, %cst_131 {dimension_numbers = #tpu.dot_dimension_numbers<[1], [0], [0], [1], [0, 0, 1, 1], [], []>} : vector<2x32xf32>, vector<32x1xf32>, vector<2x1xf32> -> vector<2x1xf32>
    %c0_132 = arith.constant 0 : index
    %c0_133 = arith.constant 0 : index
    %390 = vector.load %arg9[%c0_132, %c0_133] : memref<1x1xf32, #tpu.memory_space<vmem>>, vector<1x1xf32>
    %391 = vector.broadcast %390 : vector<1x1xf32> to vector<2x1xf32>
    %392 = arith.addf %389, %391 : vector<2x1xf32>
    %393 = arith.negf %392 : vector<2x1xf32>
    %394 = math.exp %393 : vector<2x1xf32>
    %cst_134 = arith.constant 1.000000e+00 : f32
    %395 = vector.broadcast %cst_134 : f32 to vector<2x1xf32>
    %396 = arith.addf %395, %394 : vector<2x1xf32>
    %397 = arith.divf %395, %396 : vector<2x1xf32>
    %c0_135 = arith.constant 0 : index
    %c0_136 = arith.constant 0 : index
    %398 = vector.load %arg10[%c0_135, %c0_136] : memref<2x1xf32, #tpu.memory_space<vmem>>, vector<2x1xf32>
    tpu.vector_store %arg10[%c0_135, %c0_136], %397 {strides = array<i32>} : memref<2x1xf32, #tpu.memory_space<vmem>>, vector<2x1xf32>,
    return
  }
}

</mosaic_0001>

<bundles_post_ra>
// kernel: model_forward.1
= control target key start
LH: loop header
LB: loop body
LE: loop exit
PB: predicated region body
PF: predicated region fallthrough
CT: control target
= control target key end

     0   :  { %s5336_s0 = inlined_call_operand.vmem [shape: s32[2], index: 0, kind: input, shape index: {}]   ;;  %s5337_s1 = inlined_call_operand.vmem [shape: s32[20,1], index: 1, kind: input, shape index: {}]   ;;  %s5338_s2 = inlined_call_operand.vmem [shape: f32[32,16], index: 2, kind: input, shape index: {}]   ;;  %s5339_s3 = inlined_call_operand.vmem [shape: f32[3,16,32], index: 3, kind: input, shape index: {}]   ;;  %s5340_s4 = inlined_call_operand.vmem [shape: f32[1,32], index: 4, kind: input, shape index: {}]   ;;  %s5341_s5 = inlined_call_operand.vmem [shape: f32[4,32,32], index: 5, kind: input, shape index: {}]   ;;  %s5342_s6 = inlined_call_operand.hbm [shape: f32[4,32,32], index: 6, kind: input, shape index: {}]   ;;  %s5343_s7 = inlined_call_operand.vmem [shape: f32[4,1,32], index: 7, kind: input, shape index: {}]   ;;  %s5344_s8 = inlined_call_operand.vmem [shape: f32[32,1], index: 8, kind: input, shape index: {}]   ;;  %s5345_s9 = inlined_call_operand.<no memory space> [shape: f32[1,1], index: 9, kind: input, shape index: {}]   ;;  %s5346_s10 = inlined_call_operand.vmem [shape: f32[2,1], index: 10, kind: output, shape index: {}]  }
   0x1   :  { %v15_v0 = vstv %s5345_s9 }
   0x2   :  { %16 = vst [vmem:[#allocation2] sm:$0x1] %v15_v0 }
   0x3   :  { %17 = vsyncpa [#allocation5], 0  ;;  %s25_s17 = sshll.u32 %s5336_s0, 4  ;;  %s26_s17 = int_to_ptr.vmem [resolvable:$true] %s25_s17 }
   0x4   :  { %18 = vsyncpa [#allocation4], 0  ;;  %s4709_s18 = scalar_lea.vmem %s26_s17, 16  ;;  %p4714_p1 = scmp.lt.s32.totalorder %s26_s17, %s26_s17 }
   0x5   :  { %p4710_p0 = scmp.ne.s32.totalorder %s26_s17, %s4709_s18  ;;  %p4715_p2 = scmp.lt.s32.totalorder %s4709_s18, %s4709_s18 }
   0x7   :  { %p4716_p3 = por %p4715_p2, %p4714_p1 }
   0x9   :  { %p4717_p4 = pnand %p4716_p3, %p4710_p0 }
   0xb   :  { %4720 = shalt.err (!%p4717_p4)
}
   0xc   :  { %s4747_s19 = smov [#allocation3]   ;;  %s4748_s20 = smov [#allocation6]  }
   0xd   :  { %28 = dma.vmem_to_smem %s26_s17, 16, %s4747_s19, [#allocation5]  }
   0xe   :  { %s44_s21 = sshll.u32 %s4748_s20, 4  ;;  %s4721_s23 = scalar_lea.hbm %s5342_s6, 2048  ;;  %s45_s21 = int_to_ptr.vmem [resolvable:$true] %s44_s21 }
   0xf   :  { %p4722_p5 = scmp.ne.s32.totalorder %s5342_s6, %s4721_s23  ;;  %p4725_p6 = scmp.lt.u32.totalorder %s4721_s23, %s5342_s6 }
  0x11   :  { %p4727_p7 = pnand %p4725_p6, %p4722_p5 }
  0x13   :  { %4730 = shalt.err (!%p4727_p7)
}
  0x14   :  { %s4731_s27 = scalar_lea.vmem %s45_s21, 2048  ;;  %p4736_p9 = scmp.lt.s32.totalorder %s45_s21, %s45_s21 }
  0x15   :  { %p4732_p8 = scmp.ne.s32.totalorder %s45_s21, %s4731_s27  ;;  %p4737_p10 = scmp.lt.s32.totalorder %s4731_s27, %s4731_s27 }
  0x17   :  { %p4738_p11 = por %p4737_p10, %p4736_p9 }
  0x19   :  { %p4739_p12 = pnand %p4738_p11, %p4732_p8 }
  0x1b   :  { %4742 = shalt.err (!%p4739_p12)
}
  0x1c   :  { %s4749_s28 = smov 128   ;;  %s4750_s29 = smov 8  }
  0x1d   :  { %50 = dma.hbm_to_vmem [thread:$0]  %s5342_s6, 2048, %s45_s21, [#allocation4], %s4749_s28, %s4749_s28, %s4750_s29  }
  0x1e   :  { %4743 = dma.done.wait [#allocation5], 16  }
  0x1f   :  { %4744 = vsyncadd [#allocation5], 4294967280 }
  0x20   :  { %4745 = dma.done.wait [#allocation4], 2048  }
  0x21   :  { %4746 = vsyncadd [#allocation4], 4294965248 }
  0x22   :  { %63 = sfence }
  0x23   :  { %v66_v1 = vld [vmem:[%s5337_s1] sm:$0xff]  ;;  %v68_v2 = vld [vmem:[%s5337_s1 + $0x10] sm:$0xf]  ;;  %v4751_v3 = vmov 0   ;;  %v88_v5 = vld [vmem:[%s5338_s2 + $0x8] sm:$0xff]  ;;  %v4752_v10 = vmov 0.0|0.0   ;;  %v64_v13 = vlaneseq }
  0x24   :  { %4573 = vset.pattern.permute.xlu0 %v4751_v3  ;;  %4574 = vset.pattern.permute.xlu1 %v4751_v3  ;;  %v87_v4 = vld [vmem:[%s5338_s2] sm:$0xff]  ;;  %v89_v6 = vld [vmem:[%s5338_s2 + $0x10] sm:$0xff]  ;;  %v90_v8 = vld [vmem:[%s5338_s2 + $0x18] sm:$0xff]  ;;  %vm4753_vm0 = vmmov 0   ;;  %v4754_v11 = vmov 0.0   ;;  %vm91_vm1 = vcmask 261120  }
  0x25   :  { %70 = vperm.xlu0 %4573, %v66_v1   ;;  %76 = vperm.xlu1 %4574, %v68_v2   ;;  %v4314_v7 = vpack.c.bf16 %v88_v5, %v87_v4  ;;  %v67_v9 = vld [vmem:[%s5337_s1 + $0x8] sm:$0xff]  ;;  %v4317_v12 = vpack.c.bf16 %v90_v8, %v89_v6  ;;  %v65_v14 = vand.u32 127, %v64_v13  ;;  %v3566_v21 = vld [vmem:[%s5339_s3 + $0x10] sm:$0xff]  ;;  %v3567_v22 = vld [vmem:[%s5339_s3 + $0x18] sm:$0xff]  ;;  %vm189_vm5 = vcmask 1045504   ;;  %s3604_s1 = sld [smem:[#allocation3 + $0x1]] }
  0x26   :  { %4313 = vmatprep.subr.bf16.mxu0 %v4752_v10  ;;  %3876 = vmatprep.mubr.msk.f32.mxu0 %vm4753_vm0, %v4754_v11  ;;  %v4319_v23 = vpack.c.bf16 %v3567_v22, %v3566_v21  ;;  %v181_v24 = vld [vmem:[%s5339_s3] sm:$0xff]  ;;  %v182_v25 = vld [vmem:[%s5339_s3 + $0x8] sm:$0xff]  ;;  %v455_v30 = vld [vmem:[%s5341_s5 + $0x10] sm:$0xff]  ;;  %vm195_vm6 = vcmask 130048   ;;  %vm357_vm7 = vcmask 1043456  }
  0x27   :  { %4315 = vmatpush3.bf16.msra.mxu0 %v4314_v7  ;;  %v4323_v26 = vpack.c.bf16 %v182_v25, %v181_v24  ;;  %v453_v27 = vld [vmem:[%s5341_s5] sm:$0xff]  ;;  %v454_v28 = vld [vmem:[%s5341_s5 + $0x8] sm:$0xff]  ;;  %v456_v31 = vld [vmem:[%s5341_s5 + $0x18] sm:$0xff] }
  0x28   :  { %4316 = vmatprep.subr.bf16.mxu0 %v4752_v10  ;;  %4320 = vmatprep.subr.bf16.mxu1 %v4319_v23  ;;  %v4331_v29 = vpack.c.bf16 %v454_v28, %v453_v27  ;;  %v4335_v32 = vpack.c.bf16 %v456_v31, %v455_v30  ;;  %v3572_v42 = vld [vmem:[%s5339_s3 + $0x20] sm:$0xff]  ;;  %v3573_v43 = vld [vmem:[%s5339_s3 + $0x28] sm:$0xff]  ;;  %v3582_v55 = vld [vmem:[%s5341_s5 + $0x30] sm:$0xff] }
  0x29   :  { %73 = vperm.xlu0 %4573, %v67_v9   ;;  %4322 = vmatpush3.bf16.msra.mxu1 %v4319_v23  ;;  %v4327_v49 = vpack.c.bf16 %v3573_v43, %v3572_v42  ;;  %v3580_v52 = vld [vmem:[%s5341_s5 + $0x20] sm:$0xff]  ;;  %v3581_v53 = vld [vmem:[%s5341_s5 + $0x28] sm:$0xff]  ;;  %v3583_v56 = vld [vmem:[%s5341_s5 + $0x38] sm:$0xff] }
  0x2a   :  { %4324 = vmatprep.subr.bf16.mxu1 %v4323_v26  ;;  %v4339_v54 = vpack.c.bf16 %v3581_v53, %v3580_v52  ;;  %v4343_v57 = vpack.c.bf16 %v3583_v56, %v3582_v55  ;;  %v3588_v58 = vld [vmem:[%s5341_s5 + $0x40] sm:$0xff]  ;;  %v3589_v59 = vld [vmem:[%s5341_s5 + $0x48] sm:$0xff]  ;;  %v3590_v2 = vld [vmem:[%s5341_s5 + $0x50] sm:$0xff] }
  0x2b   :  { %4318 = vmatpush3.bf16.msra.mxu0 %v4317_v12  ;;  %v3596_v60 = vld [vmem:[%s5341_s5 + $0x60] sm:$0xff]  ;;  %v4347_v61 = vpack.c.bf16 %v3589_v59, %v3588_v58  ;;  %v3597_v62 = vld [vmem:[%s5341_s5 + $0x68] sm:$0xff]  ;;  %v3591_v4 = vld [vmem:[%s5341_s5 + $0x58] sm:$0xff] }
  0x2c   :  { %4332 = vmatprep.subr.bf16.mxu0 %v4331_v29  ;;  %v4355_v63 = vpack.c.bf16 %v3597_v62, %v3596_v60  ;;  %v3576_v0 = vld [vmem:[%s5340_s4] ss:$0 sm:$0xff]  ;;  %v3598_v5 = vld [vmem:[%s5341_s5 + $0x70] sm:$0xff]  ;;  %v3599_v6 = vld [vmem:[%s5341_s5 + $0x78] sm:$0xff]  ;;  %v4351_v9 = vpack.c.bf16 %v3591_v4, %v3590_v2 }
  0x2d   :  { %v4359_v12 = vpack.c.bf16 %v3599_v6, %v3598_v5  ;;  %v812_v21 = vld [vmem:[#allocation6 + $0x18] sm:$0xff]  ;;  %v816_v22 = vld [vmem:[#allocation6 + $0x30] sm:$0xff]  ;;  %v820_v27 = vld [vmem:[#allocation6 + $0x48] sm:$0xff] }
  0x2e   :  { %v817_v23 = vld [vmem:[#allocation6 + $0x38] sm:$0xff]  ;;  %v824_v28 = vld [vmem:[#allocation6 + $0x60] sm:$0xff] }
  0x2f   :  { %v4961_v25 = vpack.c.bf16 %v817_v23, %v816_v22 }
  0xa4   :  { %v71_v15 = vpop.permute.xlu0 %70  ;;  %v77_v17 = vpop.permute.xlu1 %76 }
  0xa5   :  { %vm78_vm2 = vcmp.eq.s32.totalorder %v65_v14, %v71_v15  ;;  %vm80_vm4 = vcmp.eq.s32.totalorder %v65_v14, %v77_v17  ;;  %v810_v15 = vld [vmem:[#allocation6 + $0x8] sm:$0xff] }
  0xa6   :  { %v3560_v16 = vsel %vm78_vm2, 1.0, %v4754_v11  ;;  %v3562_v20 = vsel %vm80_vm4, 1.0, %v4754_v11  ;;  %v815_v17 = vld [vmem:[#allocation6 + $0x28] sm:$0xff] }
  0xa7   :  { %3877 = vmatmul.mubr.msk.f32.vlgmr.msra.gmra.mrb[0].mxu0 %vm91_vm1, %v3560_v16  ;;  %v814_v16 = vld [vmem:[#allocation6 + $0x20] sm:$0xff] }
  0xa8   :  { %v74_v18 = vpop.permute.xlu0 %73  ;;  %3879 = vmatprep.mubr.msk.f32.mxu0 %vm4753_vm0, %v4754_v11  ;;  %4334 = vmatpush3.bf16.msra.mxu0 %v4331_v29  ;;  %v825_v29 = vld [vmem:[#allocation6 + $0x68] sm:$0xff] }
  0xa9   :  { %vm79_vm3 = vcmp.eq.s32.totalorder %v65_v14, %v74_v18  ;;  %4336 = vmatprep.subr.bf16.mxu0 %v4335_v32  ;;  %v809_v14 = vld [vmem:[#allocation6] sm:$0xff]  ;;  %v4973_v31 = vpack.c.bf16 %v825_v29, %v824_v28 }
  0xaa   :  { %v3561_v19 = vsel %vm79_vm3, 1.0, %v4754_v11  ;;  %v4949_v18 = vpack.c.bf16 %v810_v15, %v809_v14  ;;  %vm3552_vm3 = vcmask 1024  }
  0xab   :  { %3880 = vmatmul.mubr.msk.f32.gmra.mrb[2].mxu0 %vm91_vm1, %v3561_v19  ;;  %v4951_v19 = vpack.c.bf16 %v815_v17, %v814_v16 }
  0xac   :  { %3882 = vmatprep.mubr.msk.f32.mxu0 %vm4753_vm0, %v4754_v11  ;;  %4338 = vmatpush3.bf16.msra.mxu0 %v4335_v32  ;;  %v821_v32 = vld [vmem:[#allocation6 + $0x50] sm:$0xff] }
  0xad   :  { %4348 = vmatprep.subr.bf16.mxu0 %v4347_v61 }
  0xaf   :  { %3883 = vmatmul.mubr.msk.f32.gmra.mrb[4].mxu0 %vm91_vm1, %v3562_v20  ;;  %v811_v20 = vld [vmem:[#allocation6 + $0x10] sm:$0xff] }
  0xb0   :  { %v4959_v24 = vpack.c.bf16 %v812_v21, %v811_v20 }
 0x17a   :  { %v167_v33 = vpop.f32.mrb[0].mxu0 }
 0x17b   :  { %v3878_v34 = vpop.f32.mrb[1].mxu0  ;;  %v190_v36 = vrot.slane %v167_v33, 2  ;;  %v358_v37 = vrot.slane %v167_v33, 4 }
 0x17c   :  { %v826_v34 = vld [vmem:[#allocation6 + $0x70] sm:$0xff] }
 0x17e   :  { %v172_v35 = vpop.f32.mrb[2].mxu0 }
 0x17f   :  { %v191_v38 = vrot.slane %v172_v35, 2  ;;  %v359_v39 = vrot.slane %v172_v35, 4  ;;  %v3881_v40 = vpop.f32.mrb[3].mxu0 }
 0x181   :  { %v192_v41 = vsel %vm189_vm5, %v190_v36, %v191_v38  ;;  %v360_v44 = vsel %vm357_vm7, %v358_v37, %v359_v39 }
 0x182   :  { %v177_v45 = vpop.f32.mrb[4].mxu0  ;;  %3889 = vmatprep.mubr.msk.f32.mxu1 %vm195_vm6, %v192_v41 }
 0x183   :  { %v193_v46 = vrot.slane %v177_v45, 2  ;;  %v361_v47 = vrot.slane %v177_v45, 4  ;;  %v3884_v48 = vpop.f32.mrb[5].mxu0 }
 0x185   :  { %v194_v50 = vsel %vm189_vm5, %v191_v38, %v193_v46  ;;  %v362_v51 = vsel %vm357_vm7, %v359_v39, %v361_v47  ;;  %v3577_v38 = vld [vmem:[%s5343_s7] ss:$0 sm:$0xff]  ;;  %v3585_v39 = vld [vmem:[%s5343_s7 + $0x1] ss:$0 sm:$0xff]  ;;  %v3593_v46 = vld [vmem:[%s5343_s7 + $0x2] ss:$0 sm:$0xff] }
 0x186   :  { %3890 = vmatmul.mubr.msk.f32.vlgmr.msra.gmra.mrb[0].mxu1 %vm195_vm6, %v194_v50  ;;  %v3601_v47 = vld [vmem:[%s5343_s7 + $0x3] ss:$0 sm:$0xff]  ;;  %s831_s7 = sld [smem:[#allocation3]] }
 0x187   :  { %4326 = vmatpush3.bf16.msra.mxu1 %v4323_v26  ;;  %3896 = vmatprep.mubr.msk.f32.mxu1 %vm195_vm6, %v167_v33  ;;  %v819_v26 = vld [vmem:[#allocation6 + $0x40] sm:$0xff]  ;;  %v822_v33 = vld [vmem:[#allocation6 + $0x58] sm:$0xff] }
 0x188   :  { %4328 = vmatprep.subr.bf16.mxu1 %v4327_v49  ;;  %v4971_v30 = vpack.c.bf16 %v820_v27, %v819_v26  ;;  %v4981_v36 = vpack.c.bf16 %v822_v33, %v821_v32  ;;  %v829_v27 = vshrl.u32 %v64_v13, 7  ;;  %v836_v32 = vstv %s3604_s1 }
 0x18a   :  { %vm830_vm8 = vcmp.eq.s32.totalorder %v829_v27, 0  ;;  %vm834_vm9 = vcmp.eq.s32.totalorder %v829_v27, 1 }
 0x18c   :  { %v832_v29 = vstv %s831_s7 }
 0x18d   :  { %v833_v33 = vsel %vm830_vm8, %v832_v29, 0 }
 0x18e   :  { %3897 = vmatmul.mubr.msk.f32.vlgmr.msra.gmra.mrb[0].mxu1 %vm195_vm6, %v172_v35  ;;  %v827_v35 = vld [vmem:[#allocation6 + $0x78] sm:$0xff] }
 0x18f   :  { %4330 = vmatpush3.bf16.msra.mxu1 %v4327_v49  ;;  %3903 = vmatprep.mubr.msk.f32.mxu1 %vm195_vm6, %v360_v44  ;;  %v4983_v37 = vpack.c.bf16 %v827_v35, %v826_v34  ;;  %v5045_v34 = vsel %vm834_vm9, %v836_v32, %v833_v33 }
 0x190   :  { %4340 = vmatprep.subr.bf16.mxu1 %v4339_v54  ;;  %vm1149_vm10 = vcmp.gt.s32.totalorder %v5045_v34, 0  ;;  %vm1478_vm11 = vcmp.gt.s32.totalorder %v5045_v34, 1  ;;  %vm1809_vm12 = vcmp.gt.s32.totalorder %v5045_v34, 2  ;;  %vm2140_vm13 = vcmp.gt.s32.totalorder %v5045_v34, 3 }
 0x191   :  { %vm2459_vm14 = vcmp.gt.s32.totalorder %v5045_v34, 4  ;;  %vm2788_vm15 = vcmp.gt.s32.totalorder %v5045_v34, 5  ;;  %vm3119_vm2 = vcmp.gt.s32.totalorder %v5045_v34, 6 }
 0x196   :  { %3904 = vmatmul.mubr.msk.f32.vlgmr.msra.gmra.mrb[0].mxu1 %vm195_vm6, %v362_v51 }
 0x197   :  { %4342 = vmatpush3.bf16.msra.mxu1 %v4339_v54 }
 0x198   :  { %4344 = vmatprep.subr.bf16.mxu1 %v4343_v57 }
 0x19b   :  { %4346 = vmatpush3.bf16.msra.mxu1 %v4343_v57 }
 0x19c   :  { %4356 = vmatprep.subr.bf16.mxu1 %v4355_v63 }
 0x269   :  { %v3905_v1 = vpop.f32.mrb[0].mxu1 }
 0x26a   :  { %v433_v3 = vpop.f32.mrb[1].mxu1  ;;  %v452_v8 = vadd.f32 %v3905_v1, %v3576_v0 }
 0x26b   :  { %v451_v7 = vadd.f32 %v3576_v0, %v433_v3 }
 0x26d   :  { %3914 = vmatprep.mubr.msk.f32.mxu0 %vm91_vm1, %v451_v7  ;;  %3925 = vmatprep.mubr.msk.f32.mxu1 %vm91_vm1, %v451_v7 }
 0x26e   :  { %3915 = vmatmul.mubr.msk.f32.vlgmr.msra.gmra.mrb[6].mxu0 %vm91_vm1, %v452_v8  ;;  %3926 = vmatmul.mubr.msk.f32.vlgmr.msra.gmra.mrb[2].mxu1 %vm91_vm1, %v452_v8 }
 0x26f   :  { %4350 = vmatpush3.bf16.msra.mxu0 %v4347_v61  ;;  %4358 = vmatpush3.bf16.msra.mxu1 %v4355_v63 }
 0x270   :  { %3936 = vmatprep.mubr.msk.f32.mxu0 %vm91_vm1, %v451_v7  ;;  %3947 = vmatprep.mubr.msk.f32.mxu1 %vm91_vm1, %v451_v7 }
 0x271   :  { %4352 = vmatprep.subr.bf16.mxu0 %v4351_v9  ;;  %4360 = vmatprep.subr.bf16.mxu1 %v4359_v12 }
 0x273   :  { %4354 = vmatpush3.bf16.msra.mxu0 %v4351_v9  ;;  %4362 = vmatpush3.bf16.msra.mxu1 %v4359_v12 }
 0x274   :  { %4363 = vmatprep.subr.bf16.mxu0 %v4752_v10  ;;  %4369 = vmatprep.subr.bf16.mxu1 %v4752_v10 }
 0x276   :  { %3937 = vmatmul.mubr.msk.f32.vlgmr.msra.gmra.mrb[8].mxu0 %vm91_vm1, %v452_v8  ;;  %3948 = vmatmul.mubr.msk.f32.vlgmr.msra.gmra.mrb[4].mxu1 %vm91_vm1, %v452_v8 }
 0x277   :  { %4365 = vmatpush3.bf16.msra.mxu0 %v4949_v18  ;;  %4371 = vmatpush3.bf16.msra.mxu1 %v4951_v19 }
 0x278   :  { %4366 = vmatprep.subr.bf16.mxu0 %v4752_v10  ;;  %4372 = vmatprep.subr.bf16.mxu1 %v4752_v10 }
 0x279   :  { %3958 = vmatprep.mubr.msk.f32.mxu0 %vm4753_vm0, %v4754_v11  ;;  %3969 = vmatprep.mubr.msk.f32.mxu1 %vm4753_vm0, %v4754_v11 }
 0x27b   :  { %4368 = vmatpush3.bf16.msra.mxu0 %v4959_v24  ;;  %4374 = vmatpush3.bf16.msra.mxu1 %v4961_v25 }
 0x27c   :  { %4375 = vmatprep.subr.bf16.mxu0 %v4752_v10  ;;  %4381 = vmatprep.subr.bf16.mxu1 %v4752_v10 }
 0x27e   :  { %3959 = vmatmul.mubr.f32.vlgmr.msra.gmra.mrb[10].mxu0 %v4754_v11  ;;  %3970 = vmatmul.mubr.f32.vlgmr.msra.gmra.mrb[6].mxu1 %v4754_v11 }
 0x27f   :  { %4377 = vmatpush3.bf16.msra.mxu0 %v4971_v30  ;;  %4383 = vmatpush3.bf16.msra.mxu1 %v4973_v31 }
 0x280   :  { %4378 = vmatprep.subr.bf16.mxu0 %v4752_v10  ;;  %4384 = vmatprep.subr.bf16.mxu1 %v4752_v10 }
 0x281   :  { %3980 = vmatprep.mubr.msk.f32.mxu0 %vm4753_vm0, %v4754_v11  ;;  %3991 = vmatprep.mubr.msk.f32.mxu1 %vm4753_vm0, %v4754_v11 }
 0x283   :  { %4380 = vmatpush3.bf16.msra.mxu0 %v4981_v36  ;;  %4386 = vmatpush3.bf16.msra.mxu1 %v4983_v37 }
 0x284   :  { %4387 = vmatprep.subr.bf16.mxu0 %v4752_v10  ;;  %4393 = vmatprep.subr.bf16.mxu1 %v4752_v10 }
 0x286   :  { %3981 = vmatmul.mubr.f32.vlgmr.msra.gmra.mrb[12].mxu0 %v4754_v11  ;;  %3992 = vmatmul.mubr.f32.vlgmr.msra.gmra.mrb[8].mxu1 %v4754_v11 }
 0x287   :  { %4389 = vmatpush3.bf16.msra.mxu0 %v4949_v18  ;;  %4395 = vmatpush3.bf16.msra.mxu1 %v4951_v19 }
 0x288   :  { %4390 = vmatprep.subr.bf16.mxu0 %v4752_v10  ;;  %4396 = vmatprep.subr.bf16.mxu1 %v4752_v10 }
 0x289   :  { %4002 = vmatprep.mubr.msk.f32.mxu0 %vm4753_vm0, %v4754_v11  ;;  %4013 = vmatprep.mubr.msk.f32.mxu1 %vm4753_vm0, %v4754_v11 }
 0x28b   :  { %4392 = vmatpush3.bf16.msra.mxu0 %v4959_v24  ;;  %4398 = vmatpush3.bf16.msra.mxu1 %v4961_v25 }
 0x28c   :  { %4399 = vmatprep.subr.bf16.mxu0 %v4752_v10  ;;  %4405 = vmatprep.subr.bf16.mxu1 %v4752_v10 }
 0x341   :  { %v3916_v40 = vpop.f32.mrb[6].mxu0  ;;  %v3927_v41 = vpop.f32.mrb[2].mxu1 }
 0x342   :  { %v5015_v42 = vadd.f32 %v3916_v40, %v3577_v38  ;;  %v5017_v43 = vadd.f32 %v3927_v41, %v3585_v39  ;;  %v536_v44 = vpop.f32.mrb[7].mxu0  ;;  %v624_v45 = vpop.f32.mrb[3].mxu1 }
 0x343   :  { %v5029_v54 = vadd.f32 %v3577_v38, %v536_v44  ;;  %v5031_v55 = vadd.f32 %v3585_v39, %v624_v45 }
 0x349   :  { %v3938_v48 = vpop.f32.mrb[8].mxu0  ;;  %v3949_v49 = vpop.f32.mrb[4].mxu1 }
 0x34a   :  { %v5025_v50 = vadd.f32 %v3938_v48, %v3593_v46  ;;  %v5027_v51 = vadd.f32 %v3949_v49, %v3601_v47  ;;  %v712_v52 = vpop.f32.mrb[9].mxu0  ;;  %v800_v53 = vpop.f32.mrb[5].mxu1 }
 0x34b   :  { %v5035_v0 = vadd.f32 %v3601_v47, %v800_v53  ;;  %v5038_v6 = vadd.f32 %v3593_v46, %v712_v52 }
 0x351   :  { %v907_v56 = vpop.f32.mrb[10].mxu0  ;;  %v978_v57 = vpop.f32.mrb[6].mxu1 }
 0x352   :  { %v911_v58 = vadd.f32 %v907_v56, %v5029_v54  ;;  %v982_v59 = vadd.f32 %v978_v57, %v5031_v55  ;;  %v3960_v60 = vpop.f32.mrb[11].mxu0  ;;  %v3971_v61 = vpop.f32.mrb[7].mxu1 }
 0x354   :  { %v3605_v62 = vmul.f32 -1.442695, %v911_v58  ;;  %v3606_v63 = vmul.f32 -1.442695, %v982_v59 }
 0x356   :  { %4575 = vpow2.f32 %v3605_v62 }
 0x357   :  { %4577 = vpow2.f32 %v3606_v63 }
 0x359   :  { %v1049_v1 = vpop.f32.mrb[12].mxu0  ;;  %v1120_v2 = vpop.f32.mrb[8].mxu1 }
 0x35a   :  { %v1124_v3 = vadd.f32 %v1120_v2, %v5035_v0  ;;  %v3982_v4 = vpop.f32.mrb[13].mxu0  ;;  %v3993_v5 = vpop.f32.mrb[9].mxu1  ;;  %v1053_v8 = vadd.f32 %v1049_v1, %v5038_v6 }
 0x35c   :  { %v3607_v7 = vmul.f32 -1.442695, %v1124_v3 }
 0x35e   :  { %4579 = vpow2.f32 %v3607_v7 }
 0x35f   :  { %4581 = vtanh.f32 %v1053_v8 }
 0x360   :  { %v4576_v9 = vpop.eup %4575 }
 0x361   :  { %v4578_v12 = vpop.eup %4577  ;;  %v1128_v14 = vadd.f32 1.0, %v4576_v9 }
 0x362   :  { %v1134_v15 = vadd.f32 1.0, %v4578_v12 }
 0x363   :  { %4583 = vrcp.f32 %v1128_v14 }
 0x364   :  { %4585 = vrcp.f32 %v1134_v15 }
 0x368   :  { %v4580_v16 = vpop.eup %4579 }
 0x369   :  { %v4582_v17 = vpop.eup %4581  ;;  %v1141_v23 = vadd.f32 1.0, %v4580_v16 }
 0x36b   :  { %4587 = vrcp.f32 %v1141_v23 }
 0x36d   :  { %v4584_v20 = vpop.eup %4583 }
 0x36e   :  { %v4586_v21 = vpop.eup %4585  ;;  %v1145_v22 = vmul.f32 %v4584_v20, %v4582_v17 }
 0x36f   :  { %v1144_v26 = vmul.f32 0.0, %v4586_v21 }
 0x371   :  { %v5042_v28 = vadd.f32 %v1145_v22, %v1144_v26 }
 0x373   :  { %4589 = vtanh.f32 %v5042_v28  ;;  %v1471_v12 = vrot.slane %v5042_v28, 6 }
 0x375   :  { %v4588_v35 = vpop.eup %4587 }
 0x37d   :  { %v4590_v38 = vpop.eup %4589 }
 0x37e   :  { %v1148_v39 = vmul.f32 %v4590_v38, %v4588_v35 }
 0x380   :  { %v5048_v40 = vsel %vm1149_vm10, %v1148_v39, 0.0  ;;  %4003 = vmatmul.mubr.msk.f32.vlgmr.msra.gmra.mrb[14].mxu0 %vm91_vm1, %v1148_v39  ;;  %4014 = vmatmul.mubr.msk.f32.vlgmr.msra.gmra.mrb[10].mxu1 %vm91_vm1, %v1148_v39 }
 0x381   :  { %4401 = vmatpush3.bf16.msra.mxu0 %v4971_v30  ;;  %4407 = vmatpush3.bf16.msra.mxu1 %v4973_v31 }
 0x382   :  { %4402 = vmatprep.subr.bf16.mxu0 %v4752_v10  ;;  %4408 = vmatprep.subr.bf16.mxu1 %v4752_v10 }
 0x383   :  { %4024 = vmatprep.mubr.msk.f32.mxu0 %vm4753_vm0, %v4754_v11  ;;  %4035 = vmatprep.mubr.msk.f32.mxu1 %vm4753_vm0, %v4754_v11 }
 0x385   :  { %4404 = vmatpush3.bf16.msra.mxu0 %v4981_v36  ;;  %4410 = vmatpush3.bf16.msra.mxu1 %v4983_v37 }
 0x386   :  { %4411 = vmatprep.subr.bf16.mxu0 %v4752_v10  ;;  %4417 = vmatprep.subr.bf16.mxu1 %v4752_v10 }
 0x388   :  { %4025 = vmatmul.mubr.msk.f32.vlgmr.msra.gmra.mrb[16].mxu0 %vm91_vm1, %v1148_v39  ;;  %4036 = vmatmul.mubr.msk.f32.vlgmr.msra.gmra.mrb[12].mxu1 %vm91_vm1, %v1148_v39 }
 0x389   :  { %4413 = vmatpush3.bf16.msra.mxu0 %v4949_v18  ;;  %4419 = vmatpush3.bf16.msra.mxu1 %v4951_v19 }
 0x38a   :  { %4414 = vmatprep.subr.bf16.mxu0 %v4752_v10  ;;  %4420 = vmatprep.subr.bf16.mxu1 %v4752_v10 }
 0x38b   :  { %4046 = vmatprep.mubr.msk.f32.mxu0 %vm4753_vm0, %v4754_v11  ;;  %4057 = vmatprep.mubr.msk.f32.mxu1 %vm4753_vm0, %v4754_v11 }
 0x38d   :  { %4416 = vmatpush3.bf16.msra.mxu0 %v4959_v24  ;;  %4422 = vmatpush3.bf16.msra.mxu1 %v4961_v25 }
 0x38e   :  { %4423 = vmatprep.subr.bf16.mxu0 %v4752_v10  ;;  %4429 = vmatprep.subr.bf16.mxu1 %v4752_v10 }
 0x453   :  { %v1221_v13 = vpop.f32.mrb[14].mxu0  ;;  %v1295_v41 = vpop.f32.mrb[10].mxu1 }
 0x454   :  { %v1226_v44 = vrot.slane %v1221_v13, 6  ;;  %v1300_v45 = vrot.slane %v1295_v41, 6  ;;  %v4004_v46 = vpop.f32.mrb[15].mxu0  ;;  %v4015_v47 = vpop.f32.mrb[11].mxu1 }
 0x456   :  { %v1228_v48 = vadd.f32 %v1226_v44, %v5029_v54  ;;  %v1302_v49 = vadd.f32 %v1300_v45, %v5031_v55 }
 0x458   :  { %v3612_v52 = vmul.f32 -1.442695, %v1228_v48  ;;  %v3613_v53 = vmul.f32 -1.442695, %v1302_v49 }
 0x45a   :  { %4591 = vpow2.f32 %v3612_v52 }
 0x45b   :  { %4593 = vpow2.f32 %v3613_v53  ;;  %v1369_v56 = vpop.f32.mrb[16].mxu0  ;;  %v1443_v57 = vpop.f32.mrb[12].mxu1 }
 0x45c   :  { %v1448_v58 = vrot.slane %v1443_v57, 6  ;;  %v4026_v59 = vpop.f32.mrb[17].mxu0  ;;  %v4037_v60 = vpop.f32.mrb[13].mxu1  ;;  %v1374_v61 = vrot.slane %v1369_v56, 6 }
 0x45e   :  { %v1450_v62 = vadd.f32 %v1448_v58, %v5035_v0  ;;  %v1376_v1 = vadd.f32 %v1374_v61, %v5038_v6 }
 0x460   :  { %v3614_v63 = vmul.f32 -1.442695, %v1450_v62 }
 0x462   :  { %4595 = vpow2.f32 %v3614_v63 }
 0x463   :  { %4597 = vtanh.f32 %v1376_v1 }
 0x464   :  { %v4592_v2 = vpop.eup %4591 }
 0x465   :  { %v4594_v3 = vpop.eup %4593  ;;  %v1454_v4 = vadd.f32 1.0, %v4592_v2 }
 0x466   :  { %v1460_v5 = vadd.f32 1.0, %v4594_v3 }
 0x467   :  { %4599 = vrcp.f32 %v1454_v4 }
 0x468   :  { %4601 = vrcp.f32 %v1460_v5 }
 0x46c   :  { %v4596_v7 = vpop.eup %4595 }
 0x46d   :  { %v4598_v8 = vpop.eup %4597  ;;  %v1467_v16 = vadd.f32 1.0, %v4596_v7 }
 0x46f   :  { %4603 = vrcp.f32 %v1467_v16 }
 0x471   :  { %v4600_v9 = vpop.eup %4599 }
 0x472   :  { %v4602_v14 = vpop.eup %4601  ;;  %v1474_v15 = vmul.f32 %v4600_v9, %v4598_v8 }
 0x473   :  { %v1473_v17 = vmul.f32 %v4602_v14, %v1471_v12 }
 0x475   :  { %v5083_v20 = vadd.f32 %v1474_v15, %v1473_v17 }
 0x477   :  { %4605 = vtanh.f32 %v5083_v20  ;;  %v1802_v2 = vrot.slane %v5083_v20, 6 }
 0x479   :  { %v4604_v21 = vpop.eup %4603 }
 0x481   :  { %v4606_v22 = vpop.eup %4605 }
 0x482   :  { %v1477_v23 = vmul.f32 %v4606_v22, %v4604_v21 }
 0x484   :  { %v1480_v26 = vrot.slane %v1477_v23, 2 }
 0x486   :  { %v1482_v27 = vsel %vm1478_vm11, %v1480_v26, 0.0  ;;  %4047 = vmatmul.mubr.msk.f32.vlgmr.msra.gmra.mrb[18].mxu0 %vm91_vm1, %v1480_v26  ;;  %4058 = vmatmul.mubr.msk.f32.vlgmr.msra.gmra.mrb[14].mxu1 %vm91_vm1, %v1480_v26 }
 0x487   :  { %v5092_v28 = vadd.f32 %v1482_v27, %v5048_v40  ;;  %4425 = vmatpush3.bf16.msra.mxu0 %v4971_v30  ;;  %4431 = vmatpush3.bf16.msra.mxu1 %v4973_v31 }
 0x488   :  { %4426 = vmatprep.subr.bf16.mxu0 %v4752_v10  ;;  %4432 = vmatprep.subr.bf16.mxu1 %v4752_v10 }
 0x489   :  { %4068 = vmatprep.mubr.msk.f32.mxu0 %vm4753_vm0, %v4754_v11  ;;  %4079 = vmatprep.mubr.msk.f32.mxu1 %vm4753_vm0, %v4754_v11 }
 0x48b   :  { %4428 = vmatpush3.bf16.msra.mxu0 %v4981_v36  ;;  %4434 = vmatpush3.bf16.msra.mxu1 %v4983_v37 }
 0x48c   :  { %4435 = vmatprep.subr.bf16.mxu0 %v4752_v10  ;;  %4441 = vmatprep.subr.bf16.mxu1 %v4752_v10 }
 0x48e   :  { %4069 = vmatmul.mubr.msk.f32.vlgmr.msra.gmra.mrb[20].mxu0 %vm91_vm1, %v1480_v26  ;;  %4080 = vmatmul.mubr.msk.f32.vlgmr.msra.gmra.mrb[16].mxu1 %vm91_vm1, %v1480_v26 }
 0x48f   :  { %4437 = vmatpush3.bf16.msra.mxu0 %v4949_v18  ;;  %4443 = vmatpush3.bf16.msra.mxu1 %v4951_v19 }
 0x490   :  { %4438 = vmatprep.subr.bf16.mxu0 %v4752_v10  ;;  %4444 = vmatprep.subr.bf16.mxu1 %v4752_v10 }
 0x491   :  { %4090 = vmatprep.mubr.msk.f32.mxu0 %vm4753_vm0, %v4754_v11  ;;  %4101 = vmatprep.mubr.msk.f32.mxu1 %vm4753_vm0, %v4754_v11 }
 0x493   :  { %4440 = vmatpush3.bf16.msra.mxu0 %v4959_v24  ;;  %4446 = vmatpush3.bf16.msra.mxu1 %v4961_v25 }
 0x494   :  { %4447 = vmatprep.subr.bf16.mxu0 %v4752_v10  ;;  %4453 = vmatprep.subr.bf16.mxu1 %v4752_v10 }
 0x559   :  { %v1552_v29 = vpop.f32.mrb[18].mxu0  ;;  %v1626_v32 = vpop.f32.mrb[14].mxu1 }
 0x55a   :  { %v1557_v33 = vrot.slane %v1552_v29, 4  ;;  %v1631_v35 = vrot.slane %v1626_v32, 4  ;;  %v4048_v38 = vpop.f32.mrb[19].mxu0  ;;  %v4059_v39 = vpop.f32.mrb[15].mxu1 }
 0x55c   :  { %v1559_v40 = vadd.f32 %v1557_v33, %v5029_v54  ;;  %v1633_v13 = vadd.f32 %v1631_v35, %v5031_v55 }
 0x55e   :  { %v3619_v41 = vmul.f32 -1.442695, %v1559_v40  ;;  %v3620_v44 = vmul.f32 -1.442695, %v1633_v13 }
 0x560   :  { %4607 = vpow2.f32 %v3619_v41 }
 0x561   :  { %4609 = vpow2.f32 %v3620_v44  ;;  %v1700_v45 = vpop.f32.mrb[20].mxu0  ;;  %v1774_v46 = vpop.f32.mrb[16].mxu1 }
 0x562   :  { %v1779_v47 = vrot.slane %v1774_v46, 4  ;;  %v4070_v48 = vpop.f32.mrb[21].mxu0  ;;  %v4081_v49 = vpop.f32.mrb[17].mxu1  ;;  %v1705_v52 = vrot.slane %v1700_v45, 4 }
 0x564   :  { %v1781_v53 = vadd.f32 %v1779_v47, %v5035_v0  ;;  %v1707_v57 = vadd.f32 %v1705_v52, %v5038_v6 }
 0x566   :  { %v3621_v56 = vmul.f32 -1.442695, %v1781_v53 }
 0x568   :  { %4611 = vpow2.f32 %v3621_v56 }
 0x569   :  { %4613 = vtanh.f32 %v1707_v57 }
 0x56a   :  { %v4608_v58 = vpop.eup %4607 }
 0x56b   :  { %v4610_v59 = vpop.eup %4609  ;;  %v1785_v60 = vadd.f32 1.0, %v4608_v58 }
 0x56c   :  { %v1791_v61 = vadd.f32 1.0, %v4610_v59 }
 0x56d   :  { %4615 = vrcp.f32 %v1785_v60 }
 0x56e   :  { %4617 = vrcp.f32 %v1791_v61 }
 0x572   :  { %v4612_v62 = vpop.eup %4611 }
 0x573   :  { %v4614_v63 = vpop.eup %4613  ;;  %v1798_v5 = vadd.f32 1.0, %v4612_v62 }
 0x575   :  { %4619 = vrcp.f32 %v1798_v5 }
 0x577   :  { %v4616_v1 = vpop.eup %4615 }
 0x578   :  { %v4618_v3 = vpop.eup %4617  ;;  %v1805_v4 = vmul.f32 %v4616_v1, %v4614_v63 }
 0x579   :  { %v1804_v7 = vmul.f32 %v4618_v3, %v1802_v2 }
 0x57b   :  { %v5125_v8 = vadd.f32 %v1805_v4, %v1804_v7 }
 0x57d   :  { %4621 = vtanh.f32 %v5125_v8  ;;  %v2133_v56 = vrot.slane %v5125_v8, 6 }
 0x57f   :  { %v4620_v9 = vpop.eup %4619 }
 0x587   :  { %v4622_v12 = vpop.eup %4621 }
 0x588   :  { %v1808_v14 = vmul.f32 %v4622_v12, %v4620_v9 }
 0x58a   :  { %v1811_v15 = vrot.slane %v1808_v14, 4 }
 0x58c   :  { %v1813_v16 = vsel %vm1809_vm12, %v1811_v15, 0.0  ;;  %4091 = vmatmul.mubr.msk.f32.vlgmr.msra.gmra.mrb[22].mxu0 %vm91_vm1, %v1811_v15  ;;  %4102 = vmatmul.mubr.msk.f32.vlgmr.msra.gmra.mrb[18].mxu1 %vm91_vm1, %v1811_v15 }
 0x58d   :  { %4449 = vmatpush3.bf16.msra.mxu0 %v4971_v30  ;;  %4455 = vmatpush3.bf16.msra.mxu1 %v4973_v31  ;;  %v5134_v17 = vadd.f32 %v1813_v16, %v5092_v28 }
 0x58e   :  { %4450 = vmatprep.subr.bf16.mxu0 %v4752_v10  ;;  %4456 = vmatprep.subr.bf16.mxu1 %v4752_v10 }
 0x58f   :  { %4112 = vmatprep.mubr.msk.f32.mxu0 %vm4753_vm0, %v4754_v11  ;;  %4123 = vmatprep.mubr.msk.f32.mxu1 %vm4753_vm0, %v4754_v11 }
 0x591   :  { %4452 = vmatpush3.bf16.msra.mxu0 %v4981_v36  ;;  %4458 = vmatpush3.bf16.msra.mxu1 %v4983_v37 }
 0x592   :  { %4459 = vmatprep.subr.bf16.mxu0 %v4752_v10  ;;  %4465 = vmatprep.subr.bf16.mxu1 %v4752_v10 }
 0x594   :  { %4113 = vmatmul.mubr.msk.f32.vlgmr.msra.gmra.mrb[24].mxu0 %vm91_vm1, %v1811_v15  ;;  %4124 = vmatmul.mubr.msk.f32.vlgmr.msra.gmra.mrb[20].mxu1 %vm91_vm1, %v1811_v15 }
 0x595   :  { %4461 = vmatpush3.bf16.msra.mxu0 %v4949_v18  ;;  %4467 = vmatpush3.bf16.msra.mxu1 %v4951_v19 }
 0x596   :  { %4462 = vmatprep.subr.bf16.mxu0 %v4752_v10  ;;  %4468 = vmatprep.subr.bf16.mxu1 %v4752_v10 }
 0x597   :  { %4134 = vmatprep.mubr.msk.f32.mxu0 %vm4753_vm0, %v4754_v11  ;;  %4145 = vmatprep.mubr.msk.f32.mxu1 %vm4753_vm0, %v4754_v11 }
 0x599   :  { %4464 = vmatpush3.bf16.msra.mxu0 %v4959_v24  ;;  %4470 = vmatpush3.bf16.msra.mxu1 %v4961_v25 }
 0x59a   :  { %4471 = vmatprep.subr.bf16.mxu0 %v4752_v10  ;;  %4477 = vmatprep.subr.bf16.mxu1 %v4752_v10 }
 0x65f   :  { %v1883_v20 = vpop.f32.mrb[22].mxu0  ;;  %v1957_v21 = vpop.f32.mrb[18].mxu1 }
 0x660   :  { %v1888_v22 = vrot.slane %v1883_v20, 2  ;;  %v1962_v23 = vrot.slane %v1957_v21, 2  ;;  %v4092_v26 = vpop.f32.mrb[23].mxu0  ;;  %v4103_v27 = vpop.f32.mrb[19].mxu1 }
 0x662   :  { %v1890_v28 = vadd.f32 %v1888_v22, %v5029_v54  ;;  %v1964_v29 = vadd.f32 %v1962_v23, %v5031_v55 }
 0x664   :  { %v3626_v32 = vmul.f32 -1.442695, %v1890_v28  ;;  %v3627_v33 = vmul.f32 -1.442695, %v1964_v29 }
 0x666   :  { %4623 = vpow2.f32 %v3626_v32 }
 0x667   :  { %4625 = vpow2.f32 %v3627_v33  ;;  %v2031_v35 = vpop.f32.mrb[24].mxu0  ;;  %v2105_v38 = vpop.f32.mrb[20].mxu1 }
 0x668   :  { %v2110_v39 = vrot.slane %v2105_v38, 2  ;;  %v4114_v40 = vpop.f32.mrb[25].mxu0  ;;  %v4125_v13 = vpop.f32.mrb[21].mxu1  ;;  %v2036_v41 = vrot.slane %v2031_v35, 2 }
 0x66a   :  { %v2112_v44 = vadd.f32 %v2110_v39, %v5035_v0  ;;  %v2038_v46 = vadd.f32 %v2036_v41, %v5038_v6 }
 0x66c   :  { %v3628_v45 = vmul.f32 -1.442695, %v2112_v44 }
 0x66e   :  { %4627 = vpow2.f32 %v3628_v45 }
 0x66f   :  { %4629 = vtanh.f32 %v2038_v46 }
 0x670   :  { %v4624_v47 = vpop.eup %4623 }
 0x671   :  { %v4626_v48 = vpop.eup %4625  ;;  %v2116_v54 = vadd.f32 1.0, %v4624_v47 }
 0x672   :  { %v2122_v55 = vadd.f32 1.0, %v4626_v48 }
 0x673   :  { %4631 = vrcp.f32 %v2116_v54 }
 0x674   :  { %4633 = vrcp.f32 %v2122_v55 }
 0x678   :  { %v4628_v49 = vpop.eup %4627 }
 0x679   :  { %v4630_v52 = vpop.eup %4629  ;;  %v2129_v59 = vadd.f32 1.0, %v4628_v49 }
 0x67b   :  { %4635 = vrcp.f32 %v2129_v59 }
 0x67d   :  { %v4632_v53 = vpop.eup %4631 }
 0x67e   :  { %v4634_v57 = vpop.eup %4633  ;;  %v2136_v58 = vmul.f32 %v4632_v53, %v4630_v52 }
 0x67f   :  { %v2135_v0 = vmul.f32 %v4634_v57, %v2133_v56 }
 0x681   :  { %v5165_v60 = vadd.f32 %v2136_v58, %v2135_v0 }
 0x683   :  { %4637 = vtanh.f32 %v5165_v60  ;;  %v2452_v38 = vrot.slane %v5165_v60, 6 }
 0x685   :  { %v4636_v6 = vpop.eup %4635 }
 0x68d   :  { %v4638_v61 = vpop.eup %4637 }
 0x68e   :  { %v2139_v62 = vmul.f32 %v4638_v61, %v4636_v6 }
 0x690   :  { %v2142_v63 = vrot.slane %v2139_v62, 6 }
 0x692   :  { %4135 = vmatmul.mubr.msk.f32.vlgmr.msra.gmra.mrb[26].mxu0 %vm91_vm1, %v2142_v63  ;;  %4146 = vmatmul.mubr.msk.f32.vlgmr.msra.gmra.mrb[22].mxu1 %vm91_vm1, %v2142_v63  ;;  %v2144_v1 = vsel %vm2140_vm13, %v2142_v63, 0.0 }
 0x693   :  { %4473 = vmatpush3.bf16.msra.mxu0 %v4971_v30  ;;  %4479 = vmatpush3.bf16.msra.mxu1 %v4973_v31  ;;  %v5174_v2 = vadd.f32 %v2144_v1, %v5134_v17 }
 0x694   :  { %4474 = vmatprep.subr.bf16.mxu0 %v4752_v10  ;;  %4480 = vmatprep.subr.bf16.mxu1 %v4752_v10 }
 0x695   :  { %4156 = vmatprep.mubr.msk.f32.mxu0 %vm4753_vm0, %v4754_v11  ;;  %4167 = vmatprep.mubr.msk.f32.mxu1 %vm4753_vm0, %v4754_v11 }
 0x697   :  { %4476 = vmatpush3.bf16.msra.mxu0 %v4981_v36  ;;  %4482 = vmatpush3.bf16.msra.mxu1 %v4983_v37 }
 0x698   :  { %4483 = vmatprep.subr.bf16.mxu0 %v4752_v10  ;;  %4489 = vmatprep.subr.bf16.mxu1 %v4752_v10 }
 0x69a   :  { %4157 = vmatmul.mubr.msk.f32.vlgmr.msra.gmra.mrb[28].mxu0 %vm91_vm1, %v2142_v63  ;;  %4168 = vmatmul.mubr.msk.f32.vlgmr.msra.gmra.mrb[24].mxu1 %vm91_vm1, %v2142_v63 }
 0x69b   :  { %4485 = vmatpush3.bf16.msra.mxu0 %v4949_v18  ;;  %4491 = vmatpush3.bf16.msra.mxu1 %v4951_v19 }
 0x69c   :  { %4486 = vmatprep.subr.bf16.mxu0 %v4752_v10  ;;  %4492 = vmatprep.subr.bf16.mxu1 %v4752_v10 }
 0x69d   :  { %4178 = vmatprep.mubr.msk.f32.mxu0 %vm4753_vm0, %v4754_v11  ;;  %4189 = vmatprep.mubr.msk.f32.mxu1 %vm4753_vm0, %v4754_v11 }
 0x69f   :  { %4488 = vmatpush3.bf16.msra.mxu0 %v4959_v24  ;;  %4494 = vmatpush3.bf16.msra.mxu1 %v4961_v25 }
 0x6a0   :  { %4495 = vmatprep.subr.bf16.mxu0 %v4752_v10  ;;  %4501 = vmatprep.subr.bf16.mxu1 %v4752_v10 }
 0x765   :  { %v2214_v3 = vpop.f32.mrb[26].mxu0  ;;  %v2285_v4 = vpop.f32.mrb[22].mxu1 }
 0x766   :  { %v2218_v5 = vadd.f32 %v2214_v3, %v5015_v42  ;;  %v2289_v7 = vadd.f32 %v2285_v4, %v5017_v43  ;;  %v4136_v8 = vpop.f32.mrb[27].mxu0  ;;  %v4147_v9 = vpop.f32.mrb[23].mxu1 }
 0x768   :  { %v3633_v12 = vmul.f32 -1.442695, %v2218_v5  ;;  %v3634_v14 = vmul.f32 -1.442695, %v2289_v7 }
 0x76a   :  { %4639 = vpow2.f32 %v3633_v12 }
 0x76b   :  { %4641 = vpow2.f32 %v3634_v14 }
 0x76d   :  { %v2356_v15 = vpop.f32.mrb[28].mxu0  ;;  %v2427_v16 = vpop.f32.mrb[24].mxu1 }
 0x76e   :  { %v2431_v17 = vadd.f32 %v2427_v16, %v5027_v51  ;;  %v4158_v20 = vpop.f32.mrb[29].mxu0  ;;  %v4169_v21 = vpop.f32.mrb[25].mxu1  ;;  %v2360_v23 = vadd.f32 %v2356_v15, %v5025_v50 }
 0x770   :  { %v3635_v22 = vmul.f32 -1.442695, %v2431_v17 }
 0x772   :  { %4643 = vpow2.f32 %v3635_v22 }
 0x773   :  { %4645 = vtanh.f32 %v2360_v23 }
 0x774   :  { %v4640_v26 = vpop.eup %4639 }
 0x775   :  { %v4642_v27 = vpop.eup %4641  ;;  %v2435_v28 = vadd.f32 1.0, %v4640_v26 }
 0x776   :  { %v2441_v29 = vadd.f32 1.0, %v4642_v27 }
 0x777   :  { %4647 = vrcp.f32 %v2435_v28 }
 0x778   :  { %4649 = vrcp.f32 %v2441_v29 }
 0x77c   :  { %v4644_v32 = vpop.eup %4643 }
 0x77d   :  { %v4646_v33 = vpop.eup %4645  ;;  %v2448_v13 = vadd.f32 1.0, %v4644_v32 }
 0x77f   :  { %4651 = vrcp.f32 %v2448_v13 }
 0x781   :  { %v4648_v35 = vpop.eup %4647 }
 0x782   :  { %v4650_v39 = vpop.eup %4649  ;;  %v2455_v40 = vmul.f32 %v4648_v35, %v4646_v33 }
 0x783   :  { %v2454_v41 = vmul.f32 %v4650_v39, %v2452_v38 }
 0x785   :  { %v5205_v44 = vadd.f32 %v2455_v40, %v2454_v41 }
 0x787   :  { %4653 = vtanh.f32 %v5205_v44  ;;  %v2781_v17 = vrot.slane %v5205_v44, 6 }
 0x789   :  { %v4652_v45 = vpop.eup %4651 }
 0x791   :  { %v4654_v46 = vpop.eup %4653 }
 0x792   :  { %v2458_v47 = vmul.f32 %v4654_v46, %v4652_v45 }
 0x794   :  { %4179 = vmatmul.mubr.msk.f32.vlgmr.msra.gmra.mrb[30].mxu0 %vm91_vm1, %v2458_v47  ;;  %4190 = vmatmul.mubr.msk.f32.vlgmr.msra.gmra.mrb[26].mxu1 %vm91_vm1, %v2458_v47  ;;  %v2460_v48 = vsel %vm2459_vm14, %v2458_v47, 0.0 }
 0x795   :  { %4497 = vmatpush3.bf16.msra.mxu0 %v4971_v30  ;;  %4503 = vmatpush3.bf16.msra.mxu1 %v4973_v31  ;;  %v5214_v54 = vadd.f32 %v2460_v48, %v5174_v2 }
 0x796   :  { %4498 = vmatprep.subr.bf16.mxu0 %v4752_v10  ;;  %4504 = vmatprep.subr.bf16.mxu1 %v4752_v10 }
 0x797   :  { %4200 = vmatprep.mubr.msk.f32.mxu0 %vm4753_vm0, %v4754_v11  ;;  %4211 = vmatprep.mubr.msk.f32.mxu1 %vm4753_vm0, %v4754_v11 }
 0x799   :  { %4500 = vmatpush3.bf16.msra.mxu0 %v4981_v36  ;;  %4506 = vmatpush3.bf16.msra.mxu1 %v4983_v37 }
 0x79a   :  { %4507 = vmatprep.subr.bf16.mxu0 %v4752_v10  ;;  %4513 = vmatprep.subr.bf16.mxu1 %v4752_v10 }
 0x79c   :  { %4201 = vmatmul.mubr.msk.f32.vlgmr.msra.gmra.mrb[32].mxu0 %vm91_vm1, %v2458_v47  ;;  %4212 = vmatmul.mubr.msk.f32.vlgmr.msra.gmra.mrb[28].mxu1 %vm91_vm1, %v2458_v47 }
 0x79d   :  { %4509 = vmatpush3.bf16.msra.mxu0 %v4949_v18  ;;  %4515 = vmatpush3.bf16.msra.mxu1 %v4951_v19 }
 0x79e   :  { %4510 = vmatprep.subr.bf16.mxu0 %v4752_v10  ;;  %4516 = vmatprep.subr.bf16.mxu1 %v4752_v10 }
 0x79f   :  { %4222 = vmatprep.mubr.msk.f32.mxu0 %vm4753_vm0, %v4754_v11  ;;  %4233 = vmatprep.mubr.msk.f32.mxu1 %vm4753_vm0, %v4754_v11 }
 0x7a1   :  { %4512 = vmatpush3.bf16.msra.mxu0 %v4959_v24  ;;  %4518 = vmatpush3.bf16.msra.mxu1 %v4961_v25 }
 0x7a2   :  { %4519 = vmatprep.subr.bf16.mxu0 %v4752_v10  ;;  %4525 = vmatprep.subr.bf16.mxu1 %v4752_v10 }
 0x867   :  { %v2531_v55 = vpop.f32.mrb[30].mxu0  ;;  %v2605_v49 = vpop.f32.mrb[26].mxu1 }
 0x868   :  { %v2536_v52 = vrot.slane %v2531_v55, 6  ;;  %v2610_v53 = vrot.slane %v2605_v49, 6  ;;  %v4180_v56 = vpop.f32.mrb[31].mxu0  ;;  %v4191_v57 = vpop.f32.mrb[27].mxu1 }
 0x86a   :  { %v2538_v58 = vadd.f32 %v2536_v52, %v5015_v42  ;;  %v2612_v59 = vadd.f32 %v2610_v53, %v5017_v43 }
 0x86c   :  { %v3640_v0 = vmul.f32 -1.442695, %v2538_v58  ;;  %v3641_v60 = vmul.f32 -1.442695, %v2612_v59 }
 0x86e   :  { %4655 = vpow2.f32 %v3640_v0 }
 0x86f   :  { %4657 = vpow2.f32 %v3641_v60  ;;  %v2679_v6 = vpop.f32.mrb[32].mxu0  ;;  %v2753_v61 = vpop.f32.mrb[28].mxu1 }
 0x870   :  { %v2758_v62 = vrot.slane %v2753_v61, 6  ;;  %v4202_v63 = vpop.f32.mrb[33].mxu0  ;;  %v4213_v1 = vpop.f32.mrb[29].mxu1  ;;  %v2684_v2 = vrot.slane %v2679_v6, 6 }
 0x872   :  { %v2760_v3 = vadd.f32 %v2758_v62, %v5027_v51  ;;  %v2686_v5 = vadd.f32 %v2684_v2, %v5025_v50 }
 0x874   :  { %v3642_v4 = vmul.f32 -1.442695, %v2760_v3 }
 0x876   :  { %4659 = vpow2.f32 %v3642_v4 }
 0x877   :  { %4661 = vtanh.f32 %v2686_v5 }
 0x878   :  { %v4656_v7 = vpop.eup %4655 }
 0x879   :  { %v4658_v8 = vpop.eup %4657  ;;  %v2764_v9 = vadd.f32 1.0, %v4656_v7 }
 0x87a   :  { %v2770_v12 = vadd.f32 1.0, %v4658_v8 }
 0x87b   :  { %4663 = vrcp.f32 %v2764_v9 }
 0x87c   :  { %4665 = vrcp.f32 %v2770_v12 }
 0x880   :  { %v4660_v14 = vpop.eup %4659 }
 0x881   :  { %v4662_v15 = vpop.eup %4661  ;;  %v2777_v22 = vadd.f32 1.0, %v4660_v14  ;;  %v3465_v14 = vld [vmem:[%s5344_s8 + $0x18] sm:$0xff] }
 0x883   :  { %4667 = vrcp.f32 %v2777_v22 }
 0x885   :  { %v4664_v16 = vpop.eup %4663 }
 0x886   :  { %v4666_v20 = vpop.eup %4665  ;;  %v2784_v21 = vmul.f32 %v4664_v16, %v4662_v15 }
 0x887   :  { %v2783_v23 = vmul.f32 %v4666_v20, %v2781_v17 }
 0x889   :  { %v5245_v26 = vadd.f32 %v2784_v21, %v2783_v23 }
 0x88b   :  { %4669 = vtanh.f32 %v5245_v26  ;;  %v3112_v61 = vrot.slane %v5245_v26, 6 }
 0x88d   :  { %v4668_v27 = vpop.eup %4667 }
 0x895   :  { %v4670_v28 = vpop.eup %4669 }
 0x896   :  { %v2787_v29 = vmul.f32 %v4670_v28, %v4668_v27 }
 0x898   :  { %v2790_v32 = vrot.slane %v2787_v29, 2 }
 0x89a   :  { %4223 = vmatmul.mubr.msk.f32.vlgmr.msra.gmra.mrb[34].mxu0 %vm91_vm1, %v2790_v32  ;;  %4234 = vmatmul.mubr.msk.f32.vlgmr.msra.gmra.mrb[30].mxu1 %vm91_vm1, %v2790_v32  ;;  %v2792_v33 = vsel %vm2788_vm15, %v2790_v32, 0.0 }
 0x89b   :  { %4521 = vmatpush3.bf16.msra.mxu0 %v4971_v30  ;;  %4527 = vmatpush3.bf16.msra.mxu1 %v4973_v31  ;;  %v5254_v35 = vadd.f32 %v2792_v33, %v5214_v54 }
 0x89c   :  { %4522 = vmatprep.subr.bf16.mxu0 %v4752_v10  ;;  %4528 = vmatprep.subr.bf16.mxu1 %v4752_v10 }
 0x89d   :  { %4244 = vmatprep.mubr.msk.f32.mxu0 %vm4753_vm0, %v4754_v11  ;;  %4255 = vmatprep.mubr.msk.f32.mxu1 %vm4753_vm0, %v4754_v11 }
 0x89f   :  { %4524 = vmatpush3.bf16.msra.mxu0 %v4981_v36  ;;  %4530 = vmatpush3.bf16.msra.mxu1 %v4983_v37 }
 0x8a0   :  { %4531 = vmatprep.subr.bf16.mxu0 %v4752_v10  ;;  %4537 = vmatprep.subr.bf16.mxu1 %v4752_v10 }
 0x8a2   :  { %4245 = vmatmul.mubr.msk.f32.vlgmr.msra.gmra.mrb[36].mxu0 %vm91_vm1, %v2790_v32  ;;  %4256 = vmatmul.mubr.msk.f32.vlgmr.msra.gmra.mrb[32].mxu1 %vm91_vm1, %v2790_v32 }
 0x8a3   :  { %4533 = vmatpush3.bf16.msra.mxu0 %v4949_v18  ;;  %4539 = vmatpush3.bf16.msra.mxu1 %v4951_v19 }
 0x8a4   :  { %4534 = vmatprep.subr.bf16.mxu0 %v4752_v10  ;;  %4540 = vmatprep.subr.bf16.mxu1 %v4752_v10 }
 0x8a5   :  { %4266 = vmatprep.mubr.msk.f32.mxu0 %vm4753_vm0, %v4754_v11  ;;  %4277 = vmatprep.mubr.msk.f32.mxu1 %vm4753_vm0, %v4754_v11 }
 0x8a7   :  { %4536 = vmatpush3.bf16.msra.mxu0 %v4959_v24  ;;  %4542 = vmatpush3.bf16.msra.mxu1 %v4961_v25 }
 0x8a8   :  { %4543 = vmatprep.subr.bf16.mxu0 %v4752_v10  ;;  %4549 = vmatprep.subr.bf16.mxu1 %v4752_v10 }
 0x96d   :  { %v2862_v18 = vpop.f32.mrb[34].mxu0  ;;  %v2936_v19 = vpop.f32.mrb[30].mxu1 }
 0x96e   :  { %v2867_v38 = vrot.slane %v2862_v18, 4  ;;  %v2941_v39 = vrot.slane %v2936_v19, 4  ;;  %v4224_v40 = vpop.f32.mrb[35].mxu0  ;;  %v4235_v13 = vpop.f32.mrb[31].mxu1 }
 0x970   :  { %v2869_v41 = vadd.f32 %v2867_v38, %v5015_v42  ;;  %v2943_v44 = vadd.f32 %v2941_v39, %v5017_v43 }
 0x972   :  { %v3647_v45 = vmul.f32 -1.442695, %v2869_v41  ;;  %v3648_v46 = vmul.f32 -1.442695, %v2943_v44 }
 0x974   :  { %4671 = vpow2.f32 %v3647_v45 }
 0x975   :  { %4673 = vpow2.f32 %v3648_v46  ;;  %v3010_v24 = vpop.f32.mrb[36].mxu0  ;;  %v3084_v25 = vpop.f32.mrb[32].mxu1 }
 0x976   :  { %v3089_v47 = vrot.slane %v3084_v25, 4  ;;  %v4246_v48 = vpop.f32.mrb[37].mxu0  ;;  %v4257_v54 = vpop.f32.mrb[33].mxu1  ;;  %v3015_v55 = vrot.slane %v3010_v24, 4 }
 0x978   :  { %v3091_v49 = vadd.f32 %v3089_v47, %v5027_v51  ;;  %v3017_v53 = vadd.f32 %v3015_v55, %v5025_v50 }
 0x97a   :  { %v3649_v52 = vmul.f32 -1.442695, %v3091_v49 }
 0x97c   :  { %4675 = vpow2.f32 %v3649_v52 }
 0x97d   :  { %4677 = vtanh.f32 %v3017_v53 }
 0x97e   :  { %v4672_v56 = vpop.eup %4671 }
 0x97f   :  { %v4674_v57 = vpop.eup %4673  ;;  %v3095_v58 = vadd.f32 1.0, %v4672_v56 }
 0x980   :  { %v3101_v59 = vadd.f32 1.0, %v4674_v57 }
 0x981   :  { %4679 = vrcp.f32 %v3095_v58 }
 0x982   :  { %4681 = vrcp.f32 %v3101_v59 }
 0x986   :  { %v4676_v0 = vpop.eup %4675 }
 0x987   :  { %v4678_v60 = vpop.eup %4677  ;;  %v3108_v1 = vadd.f32 1.0, %v4676_v0  ;;  %v3657_v0 = vld [vmem:[#allocation2] ss:$0 sm:$0xff] }
 0x989   :  { %4683 = vrcp.f32 %v3108_v1 }
 0x98b   :  { %v4680_v6 = vpop.eup %4679 }
 0x98c   :  { %v4682_v62 = vpop.eup %4681  ;;  %v3115_v63 = vmul.f32 %v4680_v6, %v4678_v60 }
 0x98d   :  { %v3114_v2 = vmul.f32 %v4682_v62, %v3112_v61 }
 0x98f   :  { %v5285_v3 = vadd.f32 %v3115_v63, %v3114_v2 }
 0x991   :  { %4685 = vtanh.f32 %v5285_v3  ;;  %v3443_v46 = vrot.slane %v5285_v3, 6 }
 0x993   :  { %v4684_v4 = vpop.eup %4683 }
 0x99b   :  { %v4686_v5 = vpop.eup %4685 }
 0x99c   :  { %v3118_v7 = vmul.f32 %v4686_v5, %v4684_v4 }
 0x99e   :  { %v3121_v8 = vrot.slane %v3118_v7, 4 }
 0x9a0   :  { %4267 = vmatmul.mubr.msk.f32.vlgmr.msra.gmra.mrb[38].mxu0 %vm91_vm1, %v3121_v8  ;;  %4278 = vmatmul.mubr.msk.f32.vlgmr.msra.gmra.mrb[34].mxu1 %vm91_vm1, %v3121_v8  ;;  %v3123_v9 = vsel %vm3119_vm2, %v3121_v8, 0.0 }
 0x9a1   :  { %4545 = vmatpush3.bf16.msra.mxu0 %v4971_v30  ;;  %4551 = vmatpush3.bf16.msra.mxu1 %v4973_v31  ;;  %v5294_v12 = vadd.f32 %v3123_v9, %v5254_v35  ;;  %v3462_v30 = vld [vmem:[%s5344_s8] sm:$0xff]  ;;  %v3463_v31 = vld [vmem:[%s5344_s8 + $0x8] sm:$0xff] }
 0x9a2   :  { %4546 = vmatprep.subr.bf16.mxu0 %v4752_v10  ;;  %4552 = vmatprep.subr.bf16.mxu1 %v4752_v10 }
 0x9a3   :  { %4288 = vmatprep.mubr.msk.f32.mxu0 %vm4753_vm0, %v4754_v11  ;;  %4299 = vmatprep.mubr.msk.f32.mxu1 %vm4753_vm0, %v4754_v11 }
 0x9a5   :  { %4548 = vmatpush3.bf16.msra.mxu0 %v4981_v36  ;;  %4554 = vmatpush3.bf16.msra.mxu1 %v4983_v37  ;;  %v3464_v36 = vld [vmem:[%s5344_s8 + $0x10] sm:$0xff]  ;;  %v4556_v37 = vpack.c.bf16 %v3463_v31, %v3462_v30 }
 0x9a6   :  { %4555 = vmatprep.subr.bf16.mxu0 %v4752_v10  ;;  %v4559_v15 = vpack.c.bf16 %v3465_v14, %v3464_v36 }
 0x9a8   :  { %4289 = vmatmul.mubr.msk.f32.vlgmr.msra.gmra.mrb[40].mxu0 %vm91_vm1, %v3121_v8  ;;  %4300 = vmatmul.mubr.msk.f32.vlgmr.msra.gmra.mrb[36].mxu1 %vm91_vm1, %v3121_v8 }
 0x9a9   :  { %4310 = vmatprep.mubr.msk.f32.mxu0 %vm4753_vm0, %v4754_v11  ;;  %4557 = vmatpush3.bf16.msra.mxu0 %v4556_v37  ;;  %vm3450_vm0 = vcmp.gt.s32.totalorder %v5045_v34, 7 }
 0x9aa   :  { %4558 = vmatprep.subr.bf16.mxu0 %v4752_v10 }
 0x9ad   :  { %4560 = vmatpush3.bf16.msra.mxu0 %v4559_v15 }
 0xa73   :  { %v3193_v11 = vpop.f32.mrb[38].mxu0  ;;  %v3267_v16 = vpop.f32.mrb[34].mxu1 }
 0xa74   :  { %v3198_v17 = vrot.slane %v3193_v11, 2  ;;  %v3272_v20 = vrot.slane %v3267_v16, 2  ;;  %v4268_v21 = vpop.f32.mrb[39].mxu0  ;;  %v4279_v22 = vpop.f32.mrb[35].mxu1 }
 0xa76   :  { %v3200_v23 = vadd.f32 %v3198_v17, %v5015_v42  ;;  %v3274_v26 = vadd.f32 %v3272_v20, %v5017_v43 }
 0xa78   :  { %v3654_v27 = vmul.f32 -1.442695, %v3200_v23  ;;  %v3655_v28 = vmul.f32 -1.442695, %v3274_v26 }
 0xa7a   :  { %4687 = vpow2.f32 %v3654_v27 }
 0xa7b   :  { %4689 = vpow2.f32 %v3655_v28  ;;  %v3341_v29 = vpop.f32.mrb[40].mxu0  ;;  %v3415_v32 = vpop.f32.mrb[36].mxu1 }
 0xa7c   :  { %v3420_v33 = vrot.slane %v3415_v32, 2  ;;  %v4290_v35 = vpop.f32.mrb[41].mxu0  ;;  %v4301_v10 = vpop.f32.mrb[37].mxu1  ;;  %v3346_v18 = vrot.slane %v3341_v29, 2 }
 0xa7e   :  { %v3422_v19 = vadd.f32 %v3420_v33, %v5027_v51  ;;  %v3348_v39 = vadd.f32 %v3346_v18, %v5025_v50  ;;  %v3457_v50 = vsel %vm1478_vm11, %v5045_v34, 1 }
 0xa7f   :  { %v3458_v54 = vcvt.s32.f32 %v3457_v50 }
 0xa80   :  { %v3656_v38 = vmul.f32 -1.442695, %v3422_v19 }
 0xa82   :  { %4691 = vpow2.f32 %v3656_v38 }
 0xa83   :  { %4693 = vtanh.f32 %v3348_v39 }
 0xa84   :  { %v4688_v40 = vpop.eup %4687 }
 0xa85   :  { %v4690_v13 = vpop.eup %4689  ;;  %v3426_v42 = vadd.f32 1.0, %v4688_v40 }
 0xa86   :  { %v3432_v43 = vadd.f32 1.0, %v4690_v13 }
 0xa87   :  { %4695 = vrcp.f32 %v3426_v42 }
 0xa88   :  { %4697 = vrcp.f32 %v3432_v43 }
 0xa8c   :  { %v4692_v41 = vpop.eup %4691 }
 0xa8d   :  { %v4694_v44 = vpop.eup %4693  ;;  %v3439_v47 = vadd.f32 1.0, %v4692_v41 }
 0xa8f   :  { %4699 = vrcp.f32 %v3439_v47 }
 0xa91   :  { %v4696_v45 = vpop.eup %4695 }
 0xa92   :  { %v4698_v24 = vpop.eup %4697  ;;  %v3446_v25 = vmul.f32 %v4696_v45, %v4694_v44 }
 0xa93   :  { %v3445_v51 = vmul.f32 %v4698_v24, %v3443_v46 }
 0xa95   :  { %v3447_v48 = vadd.f32 %v3446_v25, %v3445_v51 }
 0xa97   :  { %4701 = vtanh.f32 %v3447_v48 }
 0xa98   :  { %4703 = vrcp.f32 %v3458_v54 }
 0xa99   :  { %v4700_v55 = vpop.eup %4699 }
 0xaa1   :  { %v4702_v49 = vpop.eup %4701 }
 0xaa2   :  { %v3449_v52 = vmul.f32 %v4702_v49, %v4700_v55  ;;  %v4704_v56 = vpop.eup %4703 }
 0xaa4   :  { %v3452_v53 = vrot.slane %v3449_v52, 6 }
 0xaa6   :  { %v3454_v57 = vsel %vm3450_vm0, %v3452_v53, 0.0 }
 0xaa7   :  { %v3455_v58 = vadd.f32 %v3454_v57, %v5294_v12 }
 0xaa9   :  { %v3461_v59 = vmul.f32 %v4704_v56, %v3455_v58 }
 0xaab   :  { %4311 = vmatmul.mubr.msk.f32.vlgmr.msra.gmra.mrb[42].mxu0 %vm91_vm1, %v3461_v59 }
 0xb7e   :  { %v3542_v60 = vpop.f32.mrb[42].mxu0 }
 0xb7f   :  { %v3543_v6 = vadd.f32 %v3657_v0, %v3542_v60  ;;  %v4312_v61 = vpop.f32.mrb[43].mxu0 }
 0xb81   :  { %v3659_v62 = vmul.f32 -1.442695, %v3543_v6 }
 0xb83   :  { %4705 = vpow2.f32 %v3659_v62 }
 0xb8d   :  { %v4706_v63 = vpop.eup %4705 }
 0xb8e   :  { %v3549_v1 = vadd.f32 1.0, %v4706_v63 }
 0xb90   :  { %4707 = vrcp.f32 %v3549_v1 }
 0xb9a   :  { %v4708_v2 = vpop.eup %4707 }
 0xb9b   :  { %3553 = vst.msk [vmem:[%s5346_s10] sm:$0x3] %vm3552_vm3, %v4708_v2 }
 0xb9c   :  { %3558 = vsyncpa [#allocation4], 1 }
 0xb9d   :  { %3559 = vsyncpa [#allocation5], 1 }

</bundles_post_ra>
